<compile_context>
chip_gen: v5e
topology: v5e:2x2
jax: 0.10.0
libtpu: 0.0.40
codegen_flags: <defaults>
</compile_context>

<pallas_src>
import numpy as np
import jax
import jax.numpy as jnp
from jax.experimental import pallas as pl
from jax.experimental.pallas import tpu as pltpu

# ------------------------- module hyper-parameters -------------------------
SR = 16000
N_FFT = 512
HOP = 160
WIN_LEN = 400
N_MELS = 40
AMIN = 1e-6
TOP_DB = 30.0            # carried for parity with __init__; torch forward never applies it
N_FREQ = N_FFT // 2 + 1  # 257 (onesided)

# DC (bin 0) and Nyquist (bin 256) have exactly-zero mel weight for this
# slaney filterbank (fmin=0, fmax=sr/2), so they are dropped losslessly.
NBIN = N_FREQ - 2        # 255 useful bins (1..255)
NFREQ_PAD = 256          # 2 * 128 lanes  >= 255
NMEL_PAD = 128           # 1 * 128 lanes  >= 40


def _round_up(x, m):
    return -(-x // m) * m


# ---------------------- deterministic parameter setup ----------------------
def _hz_to_mel(f):
    f = np.asarray(f, dtype=np.float64)
    f_sp = 200.0 / 3.0
    mels = f / f_sp
    min_log_hz = 1000.0
    min_log_mel = min_log_hz / f_sp
    logstep = np.log(6.4) / 27.0
    return np.where(f >= min_log_hz,
                    min_log_mel + np.log(np.maximum(f, min_log_hz) / min_log_hz) / logstep,
                    mels)


def _mel_to_hz(m):
    m = np.asarray(m, dtype=np.float64)
    f_sp = 200.0 / 3.0
    freqs = f_sp * m
    min_log_hz = 1000.0
    min_log_mel = min_log_hz / f_sp
    logstep = np.log(6.4) / 27.0
    return np.where(m >= min_log_mel,
                    min_log_hz * np.exp(logstep * (m - min_log_mel)),
                    freqs)


def librosa_mel_filterbank(sr, n_fft, n_mels, fmin=0.0, fmax=None):
    """Equivalent of librosa.filters.mel(sr, n_fft, n_mels) (slaney, norm='slaney')."""
    if fmax is None:
        fmax = sr / 2.0
    n_freq = 1 + n_fft // 2
    fftfreqs = np.linspace(0.0, sr / 2.0, n_freq)
    mel_pts = _mel_to_hz(np.linspace(_hz_to_mel(fmin), _hz_to_mel(fmax), n_mels + 2))
    fdiff = np.diff(mel_pts)
    ramps = mel_pts[:, None] - fftfreqs[None, :]
    weights = np.zeros((n_mels, n_freq), dtype=np.float64)
    for i in range(n_mels):
        lower = -ramps[i] / fdiff[i]
        upper = ramps[i + 2] / fdiff[i + 1]
        weights[i] = np.maximum(0.0, np.minimum(lower, upper))
    enorm = 2.0 / (mel_pts[2:n_mels + 2] - mel_pts[:n_mels])
    weights *= enorm[:, None]
    return weights.astype(np.float32)


def build_stft_matrices():
    """Windowed one-sided DFT matrices.

    Returns:
      w  : (N_FFT, 2*NFREQ_PAD)=(512, 512) f32 — [win*cos | -win*sin] for bins
           1..255 (DC/Nyquist dropped, zero-padded to 256 lanes each), fused
           into ONE RHS so the frame tile streams through the MXU once.
      cr_full, ci_full : un-dropped (N_FFT, N_FREQ) real/imag matrices (f32)
           for the float64 numpy reference.
    """
    # torch.hann_window(WIN_LEN) is periodic
    hann = 0.5 - 0.5 * np.cos(2.0 * np.pi * np.arange(WIN_LEN) / WIN_LEN)
    win = np.zeros(N_FFT, dtype=np.float64)
    left = (N_FFT - WIN_LEN) // 2            # torch.stft centers the window in n_fft
    win[left:left + WIN_LEN] = hann

    n = np.arange(N_FFT)[:, None]
    f = np.arange(N_FREQ)[None, :]
    ang = 2.0 * np.pi * n * f / N_FFT
    cr_full = (win[:, None] * np.cos(ang)).astype(np.float32)   # real part
    ci_full = (-win[:, None] * np.sin(ang)).astype(np.float32)  # imag part

    w = np.zeros((N_FFT, 2 * NFREQ_PAD), np.float32)
    w[:, :NBIN] = cr_full[:, 1:1 + NBIN]                        # bins 1..255
    w[:, NFREQ_PAD:NFREQ_PAD + NBIN] = ci_full[:, 1:1 + NBIN]
    return w, cr_full, ci_full


def build_stacked_mel(mel_basis):
    """(2*NFREQ_PAD, NMEL_PAD): [melT; melT] for bins 1..255, zero-padded.

    Multiplying square(reim) by this realizes re^2 @ melT + im^2 @ melT
    without slicing the reim intermediate.
    """
    melT = np.zeros((2 * NFREQ_PAD, NMEL_PAD), np.float32)
    melT[:NBIN, :N_MELS] = mel_basis.T[1:1 + NBIN]
    melT[NFREQ_PAD:NFREQ_PAD + NBIN, :N_MELS] = mel_basis.T[1:1 + NBIN]
    return melT


# ------------------------------ Pallas kernel ------------------------------
def _mel_kernel(fr_ref, w_ref, melT_ref, o_ref):
    # fr_ref   : (TM, N_FFT)              bf16 windowed-frame samples (flattened B*T rows)
    # w_ref    : (N_FFT, 2*NFREQ_PAD)     bf16 fused [win*cos | -win*sin] DFT matrix
    # melT_ref : (2*NFREQ_PAD, NMEL_PAD)  bf16 stacked [melT; melT] (zero padded)
    # o_ref    : (TM, NMEL_PAD)           f32  log10(mel power + amin)
    reim = jnp.dot(fr_ref[...], w_ref[...],
                   preferred_element_type=jnp.float32)       # (TM, 512) f32
    power = reim * reim                                      # square whole tile (no slices)
    melspec = jnp.dot(power.astype(jnp.bfloat16), melT_ref[...],
                      preferred_element_type=jnp.float32)    # (TM, NMEL_PAD)
    o_ref[...] = jnp.log10(melspec + AMIN)


def _choose_tiling(R, target=512):
    """Pick (tm, n_tiles, R_pad): >=2 even grid steps (v7x megacore), low row padding."""
    n_tiles = max(2, pl.cdiv(R, target))
    if n_tiles % 2:
        n_tiles += 1
    tm = _round_up(pl.cdiv(R, n_tiles), 16)   # bf16 sublane packing: multiple of 16
    return tm, n_tiles, tm * n_tiles


def mel_spectrogram_pallas(frames, w_bf16, melT_bf16):
    """frames: (B, T, N_FFT) bf16  ->  (B, T, N_MELS) f32."""
    B, T, _ = frames.shape
    R = B * T
    tm, n_tiles, R_pad = _choose_tiling(R)

    fr = frames.reshape(R, N_FFT)
    fr = jnp.pad(fr, ((0, R_pad - R), (0, 0)))

    cost = pl.CostEstimate(
        flops=2 * R_pad * (N_FFT * 2 * NFREQ_PAD + 2 * NFREQ_PAD * NMEL_PAD),
        transcendentals=R_pad * NMEL_PAD,
        bytes_accessed=(R_pad * (N_FFT * 2 + NMEL_PAD * 4)
                        + (N_FFT * 2 * NFREQ_PAD + 2 * NFREQ_PAD * NMEL_PAD) * 2),
    )

    out = pl.pallas_call(
        _mel_kernel,
        out_shape=jax.ShapeDtypeStruct((R_pad, NMEL_PAD), jnp.float32),
        grid_spec=pltpu.PrefetchScalarGridSpec(
            num_scalar_prefetch=0,
            grid=(n_tiles,),
            in_specs=[
                pl.BlockSpec((tm, N_FFT), lambda r: (r, 0)),
                # Constant-index weight specs: DMA'd once (block index never changes).
                pl.BlockSpec((N_FFT, 2 * NFREQ_PAD), lambda r: (0, 0)),
                pl.BlockSpec((2 * NFREQ_PAD, NMEL_PAD), lambda r: (0, 0)),
            ],
            out_specs=pl.BlockSpec((tm, NMEL_PAD), lambda r: (r, 0)),
        ),
        # Single row-tile axis is "parallel" so v7x shards its >=2 even steps across 2 TCs.
        compiler_params=pltpu.CompilerParams(dimension_semantics=("parallel",)),
        cost_estimate=cost,
    )(fr, w_bf16, melT_bf16)
    return out[:R, :N_MELS].reshape(B, T, N_MELS)


# ---- fully-jitted forward: reflect pad -> bf16 cast -> frame gather -> kernel ----
# TODO(synk): framing gather still expands HBM traffic ~3.2x (n_fft/hop overlap);
# the next structural step is passing the padded audio as a pl.ANY HBM ref and
# building frames in-kernel with overlapping pl.ds reads on a DMA'd slab.
def _forward_impl(y2d, w_bf16, melT_bf16):
    y2d = y2d.astype(jnp.float32)
    pad = jnp.pad(y2d, ((0, 0), (N_FFT // 2, N_FFT // 2)), mode="reflect")
    pad = pad.astype(jnp.bfloat16)                 # cast BEFORE gather: gather writes bf16
    L = pad.shape[1]
    T = 1 + (L - N_FFT) // HOP
    idx = np.arange(T)[:, None] * HOP + np.arange(N_FFT)[None, :]   # static index table
    frames = pad[:, idx]                           # (B, T, N_FFT) bf16
    return mel_spectrogram_pallas(frames, w_bf16, melT_bf16)


_forward_jit = jax.jit(_forward_impl)


# ------------------------------ module wrapper ------------------------------
class MelPallas:
    def __init__(self):
        self.mel_basis = librosa_mel_filterbank(SR, N_FFT, N_MELS)       # (40, 257)
        w, self._cr_full, self._ci_full = build_stft_matrices()
        self.w_bf16 = jnp.asarray(w, jnp.bfloat16)                       # (512, 512)
        self.melT_bf16 = jnp.asarray(build_stacked_mel(self.mel_basis),
                                     jnp.bfloat16)                       # (512, 128)

    def _forward(self, y2d):
        return _forward_jit(jnp.asarray(y2d, jnp.float32), self.w_bf16, self.melT_bf16)

    # --- list-of-lists segmentation glue (numpy, mirrors the torch code) ---
    @staticmethod
    def _stack(y, length):
        # pad
        y = [[np.pad(np.asarray(u, np.float32), (0, max(0, length - u.shape[-1])))
              if u.shape[-1] < length else np.asarray(u, np.float32)
              for u in spk] for spk in y]
        # intervals
        intervals = [[[list(range(s, s + length))
                       for s in range(0, u.shape[-1], length // 2)
                       if s + length <= u.shape[-1]] for u in spk] for spk in y]
        # gather
        segs = [[y[i][j][np.asarray(iv)]
                 for j, ivs in enumerate(intervals[i]) for iv in ivs]
                for i in range(len(y))]
        lens_min = min(len(s) for s in segs)
        return np.stack([np.stack(s[:lens_min]) for s in segs])          # (N, M, length)

    def forward(self, y, tisv_frame=None, intervals=None, utts_per_spkr=4):
        if intervals is None:
            assert tisv_frame is not None
            length = tisv_frame * HOP + WIN_LEN
            y = self._stack(y, length)
        else:
            # TODO(synk): _split (interval-indexed gather path) not exercised here.
            raise NotImplementedError
        N, M = y.shape[0], y.shape[1]
        S = self._forward(y.reshape(N * M, y.shape[-1]))
        return S.reshape(N, M, S.shape[-2], S.shape[-1])

    # pure numpy float64 reference (full 257-bin DFT) for sanity checking
    def reference(self, y2d):
        y = np.asarray(y2d, np.float64)
        pad = np.pad(y, ((0, 0), (N_FFT // 2, N_FFT // 2)), mode="reflect")
        T = 1 + (pad.shape[1] - N_FFT) // HOP
        idx = np.arange(T)[:, None] * HOP + np.arange(N_FFT)[None, :]
        frames = pad[:, idx]
        re = frames @ self._cr_full.astype(np.float64)
        im = frames @ self._ci_full.astype(np.float64)
        power = re * re + im * im
        return np.log10(power @ self.mel_basis.T.astype(np.float64) + AMIN)


# ----------------------------------- main -----------------------------------
if __name__ == "__main__":
    key = jax.random.PRNGKey(0)
    lengths = [[3200, 2600], [3600, 2400]]       # 2 speakers x 2 raw utterances
    y = []
    for spk in lengths:
        spk_utts = []
        for L in spk:
            key, sub = jax.random.split(key)
            spk_utts.append(np.asarray(jax.random.normal(sub, (L,), jnp.float32)))
        y.append(spk_utts)

    mel_mod = MelPallas()
    tisv_frame = 10                               # segment length = 10*160 + 400 = 2000
    out = mel_mod.forward(y, tisv_frame=tisv_frame)
    out = jax.block_until_ready(out)

    # sanity check vs. a float64 numpy reference of the same math
    segs = MelPallas._stack(y, tisv_frame * HOP + WIN_LEN)
    N, M, L = segs.shape
    ref = mel_mod.reference(segs.reshape(N * M, L)).reshape(N, M, -1, N_MELS)
    err = np.max(np.abs(np.asarray(out) - ref))
    assert out.shape == (N, M, 1 + L // HOP, N_MELS), out.shape
    # bf16 MXU operands -> ~0.002-0.005 abs error in log10 output (deliberate precision trade)
    assert err < 5e-2, f"max abs err {err}"
    print("KERNEL_OK")
</pallas_src>

<mosaic_0001>
module attributes {stable_mosaic.version = 11 : i64} {
  func.func @_mel_kernel(%arg0: i32, %arg1: memref<48x512xbf16, #tpu.memory_space<vmem>>, %arg2: memref<512x512xbf16, #tpu.memory_space<vmem>>, %arg3: memref<512x128xbf16, #tpu.memory_space<vmem>>, %arg4: memref<48x128xf32, #tpu.memory_space<vmem>>) attributes {dimension_semantics = [#tpu.dimension_semantics<parallel>], iteration_bounds = array<i64: 2>, scalar_prefetch = 0 : i64, scratch_operands = 0 : i64, tpu.core_type = #tpu.core_type<tc>, window_params = [{transform_indices = @transform_0, window_bounds = array<i64: 48, 512>}, {pipeline_mode = #tpu.pipeline_mode<synchronous>, transform_indices = @transform_1, window_bounds = array<i64: 512, 512>}, {pipeline_mode = #tpu.pipeline_mode<synchronous>, transform_indices = @transform_2, window_bounds = array<i64: 512, 128>}, {transform_indices = @transform_3, window_bounds = array<i64: 48, 128>}]} {
    %c0 = arith.constant 0 : index
    %c0_0 = arith.constant 0 : index
    %0 = vector.load %arg1[%c0, %c0_0] : memref<48x512xbf16, #tpu.memory_space<vmem>>, vector<48x512xbf16>
    %c0_1 = arith.constant 0 : index
    %c0_2 = arith.constant 0 : index
    %1 = vector.load %arg2[%c0_1, %c0_2] : memref<512x512xbf16, #tpu.memory_space<vmem>>, vector<512x512xbf16>
    %cst = arith.constant dense<0.000000e+00> : vector<48x512xf32>
    %2 = tpu.matmul %0, %1, %cst {dimension_numbers = #tpu.dot_dimension_numbers<[1], [0], [0], [1], [0, 0, 1, 1], [], []>} : vector<48x512xbf16>, vector<512x512xbf16>, vector<48x512xf32> -> vector<48x512xf32>
    %3 = arith.mulf %2, %2 : vector<48x512xf32>
    %4 = arith.truncf %3 : vector<48x512xf32> to vector<48x512xbf16>
    %c0_3 = arith.constant 0 : index
    %c0_4 = arith.constant 0 : index
    %5 = vector.load %arg3[%c0_3, %c0_4] : memref<512x128xbf16, #tpu.memory_space<vmem>>, vector<512x128xbf16>
    %cst_5 = arith.constant dense<0.000000e+00> : vector<48x128xf32>
    %6 = tpu.matmul %4, %5, %cst_5 {dimension_numbers = #tpu.dot_dimension_numbers<[1], [0], [0], [1], [0, 0, 1, 1], [], []>} : vector<48x512xbf16>, vector<512x128xbf16>, vector<48x128xf32> -> vector<48x128xf32>
    %cst_6 = arith.constant 9.99999997E-7 : f32
    %7 = vector.broadcast %cst_6 : f32 to vector<48x128xf32>
    %8 = arith.addf %6, %7 : vector<48x128xf32>
    %9 = math.log %8 : vector<48x128xf32>
    %cst_7 = arith.constant 0.434294492 : f32
    %10 = vector.broadcast %cst_7 : f32 to vector<48x128xf32>
    %11 = arith.mulf %9, %10 : vector<48x128xf32>
    %c0_8 = arith.constant 0 : index
    %c0_9 = arith.constant 0 : index
    %12 = vector.load %arg4[%c0_8, %c0_9] : memref<48x128xf32, #tpu.memory_space<vmem>>, vector<48x128xf32>
    tpu.vector_store %arg4[%c0_8, %c0_9], %11 {strides = array<i32>} : memref<48x128xf32, #tpu.memory_space<vmem>>, vector<48x128xf32>,
    return
  }
  func.func @transform_0(%arg0: i32) -> (i32, i32) {
    %c0_i32 = arith.constant 0 : i32
    %c0_i32_0 = arith.constant 0 : i32
    return %arg0, %c0_i32 : i32, i32
  }
  func.func @transform_1(%arg0: i32) -> (i32, i32) {
    %c0_i32 = arith.constant 0 : i32
    %c0_i32_0 = arith.constant 0 : i32
    %c0_i32_1 = arith.constant 0 : i32
    return %c0_i32, %c0_i32_0 : i32, i32
  }
  func.func @transform_2(%arg0: i32) -> (i32, i32) {
    %c0_i32 = arith.constant 0 : i32
    %c0_i32_0 = arith.constant 0 : i32
    %c0_i32_1 = arith.constant 0 : i32
    return %c0_i32, %c0_i32_0 : i32, i32
  }
  func.func @transform_3(%arg0: i32) -> (i32, i32) {
    %c0_i32 = arith.constant 0 : i32
    %c0_i32_0 = arith.constant 0 : i32
    return %arg0, %c0_i32 : i32, i32
  }
}

</mosaic_0001>

<bundles_post_ra>
// kernel: _forward_impl.1
= control target key start
LH: loop header
LB: loop body
LE: loop exit
PB: predicated region body
PF: predicated region fallthrough
CT: control target
= control target key end

     0   :  { %s2788_s12 = smov 0   ;;  %s3838_s0 = inlined_call_operand.vmem [shape: bf16[96,512], index: 0, kind: input, shape index: {}]   ;;  %s3839_s1 = inlined_call_operand.vmem [shape: bf16[512,512], index: 1, kind: input, shape index: {}]   ;;  %s3840_s2 = inlined_call_operand.vmem [shape: bf16[512,128], index: 2, kind: input, shape index: {}]   ;;  %s3841_s3 = inlined_call_operand.vmem [shape: f32[96,128], index: 3, kind: output, shape index: {}]  }
   0x1 LB: > { %s1869_s13 = sadd.s32 4294967295, %s2766_s12   ;;  %p1873_p0 = scmp.ge.s32.totalorder %s2766_s12, 1  ;;  %s2766_s12 = sphi %s2788_s12, %s13_s12  }
   0x2   : > { %p139_p1 = scmp.lt.s32.totalorder %s2766_s12, 3 }
   0x4   : > { %p140_p2 = pnand %p1873_p0, %p139_p1 }
   0x5   : > { %s164_s24 = smul.u32 (!%p140_p2), 6, %s1869_s13 }
   0x6   : > { %143 = sbr.rel (%p140_p2) target bundleno = 525 (0x20d), region = 32 }
   0x7   : > { %p165_p3 = scmp.lt.s32.totalorder (!%p140_p2), %s164_s24, 11 }
   0xb   : > { %v2039_v0 = vld [vmem:[%s3839_s1 + $0xe0] sm:$0xf]  ;;  %v2610_v1 = vld [vmem:[%s3839_s1 + $0xec] sm:$0xf0]  ;;  %s3843_s24 = smov (!%p165_p3, %s164_s24), 11 }
   0xc   : > { %v2167_v2 = vld [vmem:[%s3839_s1 + $0x1e0] sm:$0xf]  ;;  %v2040_v3 = vor.u32 %v2610_v1, %v2039_v0  ;;  %v2642_v4 = vld [vmem:[%s3839_s1 + $0x1ec] sm:$0xf0]  ;;  %s2567_s26 = sshll.u32 %s3843_s24, 4  ;;  %s1876_s25 = sshll.u32 %s3843_s24, 3 }
   0xd   : > { %v2295_v5 = vld [vmem:[%s3839_s1 + $0x2e0] sm:$0xf]  ;;  %v2674_v6 = vld [vmem:[%s3839_s1 + $0x2ec] sm:$0xf0]  ;;  %v2168_v7 = vor.u32 %v2642_v4, %v2167_v2  ;;  %s3014_s6 = scalar_lea.vmem %s3838_s0, %s2567_s26  ;;  %s3827_s27 = scalar_lea.vmem %s3841_s3, %s1876_s25 }
   0xe   : > { %v2296_v8 = vor.u32 %v2674_v6, %v2295_v5  ;;  %v2423_v9 = vld [vmem:[%s3839_s1 + $0x3e0] sm:$0xf]  ;;  %v2706_v10 = vld [vmem:[%s3839_s1 + $0x3ec] sm:$0xf0]  ;;  %1017 = vmatpush.bf16.msra.mxu0 %v2040_v3 }
   0xf   : > { %v2023_v11 = vld [vmem:[%s3839_s1 + $0xc0] sm:$0xf]  ;;  %v2424_v12 = vor.u32 %v2706_v10, %v2423_v9  ;;  %v2606_v13 = vld [vmem:[%s3839_s1 + $0xcc] sm:$0xf0]  ;;  %1041 = vmatpush.bf16.msra.mxu1 %v2168_v7 }
  0x10   : > { %v2151_v14 = vld [vmem:[%s3839_s1 + $0x1c0] sm:$0xf]  ;;  %v2638_v15 = vld [vmem:[%s3839_s1 + $0x1cc] sm:$0xf0]  ;;  %1065 = vmatpush.bf16.msra.mxu2 %v2296_v8  ;;  %v2024_v16 = vor.u32 %v2606_v13, %v2023_v11 }
  0x11   : > { %v2152_v17 = vor.u32 %v2638_v15, %v2151_v14  ;;  %v2279_v18 = vld [vmem:[%s3839_s1 + $0x2c0] sm:$0xf]  ;;  %v2670_v19 = vld [vmem:[%s3839_s1 + $0x2cc] sm:$0xf0]  ;;  %1089 = vmatpush.bf16.msra.mxu3 %v2424_v12 }
  0x12   : > { %v2407_v20 = vld [vmem:[%s3839_s1 + $0x3c0] sm:$0xf]  ;;  %v2280_v21 = vor.u32 %v2670_v19, %v2279_v18  ;;  %v2702_v22 = vld [vmem:[%s3839_s1 + $0x3cc] sm:$0xf0]  ;;  %1018 = vmatpush.bf16.msra.mxu0 %v2024_v16 }
  0x13   : > { %v2007_v23 = vld [vmem:[%s3839_s1 + $0xa0] sm:$0xf]  ;;  %v2602_v24 = vld [vmem:[%s3839_s1 + $0xac] sm:$0xf0]  ;;  %v2408_v25 = vor.u32 %v2702_v22, %v2407_v20  ;;  %1042 = vmatpush.bf16.msra.mxu1 %v2152_v17 }
  0x14   : > { %v2135_v26 = vld [vmem:[%s3839_s1 + $0x1a0] sm:$0xf]  ;;  %v2634_v27 = vld [vmem:[%s3839_s1 + $0x1ac] sm:$0xf0]  ;;  %v2008_v29 = vor.u32 %v2602_v24, %v2007_v23  ;;  %1066 = vmatpush.bf16.msra.mxu2 %v2280_v21 }
  0x15   : > { %v2263_v28 = vld [vmem:[%s3839_s1 + $0x2a0] sm:$0xf]  ;;  %v2666_v30 = vld [vmem:[%s3839_s1 + $0x2ac] sm:$0xf0]  ;;  %v2136_v33 = vor.u32 %v2634_v27, %v2135_v26  ;;  %1090 = vmatpush.bf16.msra.mxu3 %v2408_v25 }
  0x16   : > { %v2391_v31 = vld [vmem:[%s3839_s1 + $0x3a0] sm:$0xf]  ;;  %v2698_v32 = vld [vmem:[%s3839_s1 + $0x3ac] sm:$0xf0]  ;;  %v2264_v34 = vor.u32 %v2666_v30, %v2263_v28  ;;  %1019 = vmatpush.bf16.msra.mxu0 %v2008_v29  ;;  %v2672_v28 = vld [vmem:[%s3839_s1 + $0x2e4] sm:$0xf] }
  0x17   : > { %v1991_v35 = vld [vmem:[%s3839_s1 + $0x80] sm:$0xf]  ;;  %v2598_v36 = vld [vmem:[%s3839_s1 + $0x8c] sm:$0xf0]  ;;  %v2392_v38 = vor.u32 %v2698_v32, %v2391_v31  ;;  %1043 = vmatpush.bf16.msra.mxu1 %v2136_v33  ;;  %v2297_v29 = vld [vmem:[%s3839_s1 + $0x2f0] sm:$0xf0] }
  0x18   : > { %v2119_v37 = vld [vmem:[%s3839_s1 + $0x180] sm:$0xf]  ;;  %v2630_v39 = vld [vmem:[%s3839_s1 + $0x18c] sm:$0xf0]  ;;  %v1992_v44 = vor.u32 %v2598_v36, %v1991_v35  ;;  %1067 = vmatpush.bf16.msra.mxu2 %v2264_v34  ;;  %v2704_v30 = vld [vmem:[%s3839_s1 + $0x3e4] sm:$0xf] }
  0x19   : > { %v2247_v40 = vld [vmem:[%s3839_s1 + $0x280] sm:$0xf]  ;;  %v2662_v41 = vld [vmem:[%s3839_s1 + $0x28c] sm:$0xf0]  ;;  %v2120_v45 = vor.u32 %v2630_v39, %v2119_v37  ;;  %1091 = vmatpush.bf16.msra.mxu3 %v2392_v38  ;;  %v2425_v31 = vld [vmem:[%s3839_s1 + $0x3f0] sm:$0xf0] }
  0x1a   : > { %v2375_v42 = vld [vmem:[%s3839_s1 + $0x380] sm:$0xf]  ;;  %v2694_v43 = vld [vmem:[%s3839_s1 + $0x38c] sm:$0xf0]  ;;  %v2248_v46 = vor.u32 %v2662_v41, %v2247_v40  ;;  %1020 = vmatpush.bf16.msra.mxu0 %v1992_v44  ;;  %v2608_v33 = vld [vmem:[%s3839_s1 + $0xe4] sm:$0xf] }
  0x1b   : > { %v1975_v47 = vld [vmem:[%s3839_s1 + $0x60] sm:$0xf]  ;;  %v2594_v48 = vld [vmem:[%s3839_s1 + $0x6c] sm:$0xf0]  ;;  %v2376_v50 = vor.u32 %v2694_v43, %v2375_v42  ;;  %1044 = vmatpush.bf16.msra.mxu1 %v2120_v45  ;;  %v2041_v34 = vld [vmem:[%s3839_s1 + $0xf0] sm:$0xf0]  ;;  %v2300_v45 = vor.u32 %v2672_v28, %v2297_v29 }
  0x1c   : > { %v2103_v49 = vld [vmem:[%s3839_s1 + $0x160] sm:$0xf]  ;;  %v2626_v51 = vld [vmem:[%s3839_s1 + $0x16c] sm:$0xf0]  ;;  %v1976_v56 = vor.u32 %v2594_v48, %v1975_v47  ;;  %1068 = vmatpush.bf16.msra.mxu2 %v2248_v46  ;;  %v2640_v37 = vld [vmem:[%s3839_s1 + $0x1e4] sm:$0xf] }
  0x1d   : > { %v2231_v52 = vld [vmem:[%s3839_s1 + $0x260] sm:$0xf]  ;;  %v2658_v53 = vld [vmem:[%s3839_s1 + $0x26c] sm:$0xf0]  ;;  %v2104_v57 = vor.u32 %v2626_v51, %v2103_v49  ;;  %1092 = vmatpush.bf16.msra.mxu3 %v2376_v50  ;;  %v2169_v38 = vld [vmem:[%s3839_s1 + $0x1f0] sm:$0xf0]  ;;  %v2428_v51 = vor.u32 %v2704_v30, %v2425_v31 }
  0x1e   : > { %v2359_v54 = vld [vmem:[%s3839_s1 + $0x360] sm:$0xf]  ;;  %v2690_v55 = vld [vmem:[%s3839_s1 + $0x36c] sm:$0xf0]  ;;  %v2232_v58 = vor.u32 %v2658_v53, %v2231_v52  ;;  %1021 = vmatpush.bf16.msra.mxu0 %v1976_v56  ;;  %v2668_v39 = vld [vmem:[%s3839_s1 + $0x2c4] sm:$0xf] }
  0x1f   : > { %v1959_v59 = vld [vmem:[%s3839_s1 + $0x40] sm:$0xf]  ;;  %v2590_v60 = vld [vmem:[%s3839_s1 + $0x4c] sm:$0xf0]  ;;  %v2360_v62 = vor.u32 %v2690_v55, %v2359_v54  ;;  %1045 = vmatpush.bf16.msra.mxu1 %v2104_v57  ;;  %v2281_v40 = vld [vmem:[%s3839_s1 + $0x2d0] sm:$0xf0] }
  0x20   : > { %v2087_v61 = vld [vmem:[%s3839_s1 + $0x140] sm:$0xf]  ;;  %v2622_v63 = vld [vmem:[%s3839_s1 + $0x14c] sm:$0xf0]  ;;  %v1960_v4 = vor.u32 %v2590_v60, %v1959_v59  ;;  %1069 = vmatpush.bf16.msra.mxu2 %v2232_v58  ;;  %v2568_v44 = vld [vmem:[%s3014_s6 + $0x4] sm:$0xf]  ;;  %v2044_v58 = vor.u32 %v2608_v33, %v2041_v34  ;;  %v2172_v59 = vor.u32 %v2640_v37, %v2169_v38  ;;  %v2284_v60 = vor.u32 %v2668_v39, %v2281_v40 }
  0x21   : > { %v2215_v0 = vld [vmem:[%s3839_s1 + $0x240] sm:$0xf]  ;;  %v2654_v1 = vld [vmem:[%s3839_s1 + $0x24c] sm:$0xf0]  ;;  %v2088_v7 = vor.u32 %v2622_v63, %v2087_v61  ;;  %1093 = vmatpush.bf16.msra.mxu3 %v2360_v62  ;;  %v2700_v46 = vld [vmem:[%s3839_s1 + $0x3c4] sm:$0xf] }
  0x22   : > { %v2343_v2 = vld [vmem:[%s3839_s1 + $0x340] sm:$0xf]  ;;  %v2686_v3 = vld [vmem:[%s3839_s1 + $0x34c] sm:$0xf0]  ;;  %v2216_v8 = vor.u32 %v2654_v1, %v2215_v0  ;;  %1022 = vmatpush.bf16.msra.mxu0 %v1960_v4  ;;  %v1881_v48 = vld [vmem:[%s3014_s6 + $0x10] sm:$0xf0] }
  0x23   : > { %v1943_v5 = vld [vmem:[%s3839_s1 + $0x20] sm:$0xf]  ;;  %v2586_v6 = vld [vmem:[%s3839_s1 + $0x2c] sm:$0xf0]  ;;  %v2344_v12 = vor.u32 %v2686_v3, %v2343_v2  ;;  %1046 = vmatpush.bf16.msra.mxu1 %v2088_v7  ;;  %v1887_v49 = vld [vmem:[%s3014_s6 + $0x8] sm:$0xf]  ;;  %v3039_v52 = vor.u32 %v2568_v44, %v1881_v48 }
  0x24   : > { %v2071_v9 = vld [vmem:[%s3839_s1 + $0x120] sm:$0xf]  ;;  %v2618_v10 = vld [vmem:[%s3839_s1 + $0x12c] sm:$0xf0]  ;;  %v1944_v18 = vor.u32 %v2586_v6, %v1943_v5  ;;  %1070 = vmatpush.bf16.msra.mxu2 %v2216_v8  ;;  %v2571_v50 = vld [vmem:[%s3014_s6 + $0x14] sm:$0xf0] }
  0x25   : > { %v2199_v11 = vld [vmem:[%s3839_s1 + $0x220] sm:$0xf]  ;;  %v2650_v13 = vld [vmem:[%s3839_s1 + $0x22c] sm:$0xf0]  ;;  %v2072_v21 = vor.u32 %v2618_v10, %v2071_v9  ;;  %1094 = vmatpush.bf16.msra.mxu3 %v2344_v12  ;;  %v3041_v53 = vor.u32 %v2571_v50, %v1887_v49  ;;  %v2569_v54 = vld [vmem:[%s3014_s6 + $0xc] sm:$0xf] }
  0x26   : > { %v2327_v14 = vld [vmem:[%s3839_s1 + $0x320] sm:$0xf]  ;;  %v2682_v15 = vld [vmem:[%s3839_s1 + $0x32c] sm:$0xf0]  ;;  %v2200_v22 = vor.u32 %v2650_v13, %v2199_v11  ;;  %1023 = vmatpush.bf16.msra.mxu0 %v1944_v18  ;;  %v1889_v55 = vld [vmem:[%s3014_s6 + $0x18] sm:$0xf0] }
  0x27   : > { %v1927_v16 = vld [vmem:[%s3839_s1] sm:$0xf]  ;;  %v2582_v17 = vld [vmem:[%s3839_s1 + $0xc] sm:$0xf0]  ;;  %v2328_v26 = vor.u32 %v2682_v15, %v2327_v14  ;;  %1047 = vmatpush.bf16.msra.mxu1 %v2072_v21  ;;  %v2409_v56 = vld [vmem:[%s3839_s1 + $0x3d0] sm:$0xf0]  ;;  %v3048_v57 = vor.u32 %v2569_v54, %v1889_v55 }
  0x28   : > { %v2055_v19 = vld [vmem:[%s3839_s1 + $0x100] sm:$0xf]  ;;  %v2614_v20 = vld [vmem:[%s3839_s1 + $0x10c] sm:$0xf0]  ;;  %v1928_v32 = vor.u32 %v2582_v17, %v1927_v16  ;;  %1071 = vmatpush.bf16.msra.mxu2 %v2200_v22  ;;  %v2604_v61 = vld [vmem:[%s3839_s1 + $0xc4] sm:$0xf]  ;;  %v2412_v0 = vor.u32 %v2700_v46, %v2409_v56 }
  0x29   : > { %v2183_v23 = vld [vmem:[%s3839_s1 + $0x200] sm:$0xf]  ;;  %v2646_v24 = vld [vmem:[%s3839_s1 + $0x20c] sm:$0xf0]  ;;  %v2056_v35 = vor.u32 %v2614_v20, %v2055_v19  ;;  %1095 = vmatpush.bf16.msra.mxu3 %v2328_v26  ;;  %v2025_v62 = vld [vmem:[%s3839_s1 + $0xd0] sm:$0xf0] }
  0x2a   : > { %v2311_v25 = vld [vmem:[%s3839_s1 + $0x300] sm:$0xf]  ;;  %v2678_v27 = vld [vmem:[%s3839_s1 + $0x30c] sm:$0xf0]  ;;  %v2184_v36 = vor.u32 %v2646_v24, %v2183_v23  ;;  %1024 = vmatpush.bf16.msra.mxu0 %v1928_v32  ;;  %v2636_v63 = vld [vmem:[%s3839_s1 + $0x1c4] sm:$0xf]  ;;  %v2028_v6 = vor.u32 %v2604_v61, %v2025_v62 }
  0x2b   : > { %v2312_v41 = vor.u32 %v2678_v27, %v2311_v25  ;;  %v1879_v42 = vld [vmem:[%s3014_s6] sm:$0xf]  ;;  %v2570_v43 = vld [vmem:[%s3014_s6 + $0xc] sm:$0xf0]  ;;  %1048 = vmatpush.bf16.msra.mxu1 %v2056_v35  ;;  %v2153_v1 = vld [vmem:[%s3839_s1 + $0x1d0] sm:$0xf0] }
  0x2c   : > { %v3034_v47 = vor.u32 %v2570_v43, %v1879_v42  ;;  %1072 = vmatpush.bf16.msra.mxu2 %v2184_v36  ;;  %v2664_v2 = vld [vmem:[%s3839_s1 + $0x2a4] sm:$0xf]  ;;  %v2265_v3 = vld [vmem:[%s3839_s1 + $0x2b0] sm:$0xf0]  ;;  %v2156_v7 = vor.u32 %v2636_v63, %v2153_v1  ;;  %v1895_v19 = vld [vmem:[%s3014_s6 + $0x20] sm:$0xf] }
  0x2d   : > { %1096 = vmatpush.bf16.msra.mxu3 %v2312_v41  ;;  %v2696_v4 = vld [vmem:[%s3839_s1 + $0x3a4] sm:$0xf]  ;;  %v2393_v5 = vld [vmem:[%s3839_s1 + $0x3b0] sm:$0xf0]  ;;  %v2268_v8 = vor.u32 %v2664_v2, %v2265_v3  ;;  %v2574_v20 = vld [vmem:[%s3014_s6 + $0x2c] sm:$0xf0] }
  0x2e   : > { %1025 = vmatmul.bf16.vlgmr.msra.gmra.mxu0 %v3034_v47  ;;  %1049 = vmatmul.bf16.vlgmr.msra.gmra.mxu1 %v3039_v52  ;;  %v2600_v9 = vld [vmem:[%s3839_s1 + $0xa4] sm:$0xf]  ;;  %v2009_v10 = vld [vmem:[%s3839_s1 + $0xb0] sm:$0xf0]  ;;  %v2396_v12 = vor.u32 %v2696_v4, %v2393_v5  ;;  %v1903_v32 = vld [vmem:[%s3014_s6 + $0x28] sm:$0xf]  ;;  %v3143_v44 = vor.u32 %v2574_v20, %v1895_v19 }
  0x2f   : > { %1073 = vmatmul.bf16.vlgmr.msra.gmra.mxu2 %v3041_v53  ;;  %1113 = vmatpush.bf16.msrb.mxu0 %v2044_v58  ;;  %v2632_v11 = vld [vmem:[%s3839_s1 + $0x1a4] sm:$0xf]  ;;  %v2137_v13 = vld [vmem:[%s3839_s1 + $0x1b0] sm:$0xf0]  ;;  %v2012_v18 = vor.u32 %v2600_v9, %v2009_v10  ;;  %v2575_v35 = vld [vmem:[%s3014_s6 + $0x34] sm:$0xf0] }
  0x30   : > { %1161 = vmatpush.bf16.msrb.mxu2 %v2300_v45  ;;  %1097 = vmatmul.bf16.vlgmr.msra.gmra.mxu3 %v3048_v57  ;;  %v2660_v14 = vld [vmem:[%s3839_s1 + $0x284] sm:$0xf]  ;;  %v2249_v15 = vld [vmem:[%s3839_s1 + $0x290] sm:$0xf0]  ;;  %v2140_v21 = vor.u32 %v2632_v11, %v2137_v13  ;;  %v2573_v36 = vld [vmem:[%s3014_s6 + $0x2c] sm:$0xf] }
  0x31   : > { %1185 = vmatpush.bf16.msrb.mxu3 %v2428_v51  ;;  %1137 = vmatpush.bf16.msrb.mxu1 %v2172_v59  ;;  %v2692_v16 = vld [vmem:[%s3839_s1 + $0x384] sm:$0xf]  ;;  %v2377_v17 = vld [vmem:[%s3839_s1 + $0x390] sm:$0xf0]  ;;  %v2252_v22 = vor.u32 %v2660_v14, %v2249_v15  ;;  %v1905_v37 = vld [vmem:[%s3014_s6 + $0x38] sm:$0xf0]  ;;  %v3156_v51 = vor.u32 %v2575_v35, %v1903_v32 }
  0x32   : > { %v2596_v23 = vld [vmem:[%s3839_s1 + $0x84] sm:$0xf]  ;;  %v1993_v24 = vld [vmem:[%s3839_s1 + $0x90] sm:$0xf0]  ;;  %v2380_v28 = vor.u32 %v2692_v16, %v2377_v17  ;;  %v3164_v56 = vor.u32 %v2573_v36, %v1905_v37  ;;  %v2675_v19 = vld [vmem:[%s3839_s1 + $0x2f4] sm:$0xf0] }
  0x33   : > { %1114 = vmatpush.bf16.msrb.mxu0 %v2028_v6  ;;  %v2628_v25 = vld [vmem:[%s3839_s1 + $0x184] sm:$0xf]  ;;  %v1897_v27 = vld [vmem:[%s3014_s6 + $0x30] sm:$0xf0]  ;;  %v1996_v38 = vor.u32 %v2596_v23, %v1993_v24  ;;  %v1911_v23 = vld [vmem:[%s3014_s6 + $0x40] sm:$0xf] }
  0x34   : > { %1162 = vmatpush.bf16.msrb.mxu2 %v2284_v60  ;;  %v2572_v26 = vld [vmem:[%s3014_s6 + $0x24] sm:$0xf]  ;;  %v2121_v29 = vld [vmem:[%s3839_s1 + $0x190] sm:$0xf0]  ;;  %v2578_v24 = vld [vmem:[%s3014_s6 + $0x4c] sm:$0xf0] }
  0x35   : > { %1186 = vmatpush.bf16.msrb.mxu3 %v2412_v0  ;;  %1138 = vmatpush.bf16.msrb.mxu1 %v2156_v7  ;;  %v2656_v30 = vld [vmem:[%s3839_s1 + $0x264] sm:$0xf]  ;;  %v2233_v31 = vld [vmem:[%s3839_s1 + $0x270] sm:$0xf0]  ;;  %v2124_v39 = vor.u32 %v2628_v25, %v2121_v29  ;;  %v3154_v50 = vor.u32 %v2572_v26, %v1897_v27  ;;  %v2047_v35 = vld [vmem:[%s3839_s1 + $0xe8] sm:$0xf] }
  0x36   : > { %v2688_v33 = vld [vmem:[%s3839_s1 + $0x364] sm:$0xf]  ;;  %v2361_v34 = vld [vmem:[%s3839_s1 + $0x370] sm:$0xf0]  ;;  %v2236_v40 = vor.u32 %v2656_v30, %v2233_v31  ;;  %v2611_v36 = vld [vmem:[%s3839_s1 + $0xf4] sm:$0xf0] }
  0x37   : > { %1115 = vmatpush.bf16.msrb.mxu0 %v2012_v18  ;;  %v2592_v41 = vld [vmem:[%s3839_s1 + $0x64] sm:$0xf]  ;;  %v1977_v42 = vld [vmem:[%s3839_s1 + $0x70] sm:$0xf0]  ;;  %v2364_v45 = vor.u32 %v2688_v33, %v2361_v34  ;;  %v2303_v18 = vld [vmem:[%s3839_s1 + $0x2e8] sm:$0xf] }
  0x38   : > { %1163 = vmatpush.bf16.msrb.mxu2 %v2268_v8  ;;  %v2624_v43 = vld [vmem:[%s3839_s1 + $0x164] sm:$0xf]  ;;  %v2105_v46 = vld [vmem:[%s3839_s1 + $0x170] sm:$0xf0]  ;;  %v1980_v58 = vor.u32 %v2592_v41, %v1977_v42  ;;  %v2304_v34 = vor.u32 %v2675_v19, %v2303_v18  ;;  %v1919_v37 = vld [vmem:[%s3014_s6 + $0x48] sm:$0xf] }
  0x39   : > { %1187 = vmatpush.bf16.msrb.mxu3 %v2396_v12  ;;  %1139 = vmatpush.bf16.msrb.mxu1 %v2140_v21  ;;  %v2652_v48 = vld [vmem:[%s3839_s1 + $0x244] sm:$0xf]  ;;  %v2217_v49 = vld [vmem:[%s3839_s1 + $0x250] sm:$0xf0]  ;;  %v2108_v59 = vor.u32 %v2624_v43, %v2105_v46  ;;  %v2431_v21 = vld [vmem:[%s3839_s1 + $0x3e8] sm:$0xf] }
  0x3a   : > { %v2684_v54 = vld [vmem:[%s3839_s1 + $0x344] sm:$0xf]  ;;  %v2345_v55 = vld [vmem:[%s3839_s1 + $0x350] sm:$0xf0]  ;;  %v2220_v60 = vor.u32 %v2652_v48, %v2217_v49  ;;  %v2579_v41 = vld [vmem:[%s3014_s6 + $0x54] sm:$0xf0]  ;;  %v2048_v48 = vor.u32 %v2611_v36, %v2047_v35 }
  0x3b   : > { %1116 = vmatpush.bf16.msrb.mxu0 %v1996_v38  ;;  %v2588_v61 = vld [vmem:[%s3839_s1 + $0x44] sm:$0xf]  ;;  %v1961_v62 = vld [vmem:[%s3839_s1 + $0x50] sm:$0xf0]  ;;  %v2348_v0 = vor.u32 %v2684_v54, %v2345_v55  ;;  %v2577_v42 = vld [vmem:[%s3014_s6 + $0x4c] sm:$0xf] }
  0x3c   : > { %1164 = vmatpush.bf16.msrb.mxu2 %v2252_v22  ;;  %v2620_v63 = vld [vmem:[%s3839_s1 + $0x144] sm:$0xf]  ;;  %v2089_v1 = vld [vmem:[%s3839_s1 + $0x150] sm:$0xf0]  ;;  %v1964_v6 = vor.u32 %v2588_v61, %v1961_v62  ;;  %v2707_v22 = vld [vmem:[%s3839_s1 + $0x3f4] sm:$0xf0] }
  0x3d   : > { %1188 = vmatpush.bf16.msrb.mxu3 %v2380_v28  ;;  %1140 = vmatpush.bf16.msrb.mxu1 %v2124_v39  ;;  %v2648_v2 = vld [vmem:[%s3839_s1 + $0x224] sm:$0xf]  ;;  %v2201_v3 = vld [vmem:[%s3839_s1 + $0x230] sm:$0xf0]  ;;  %v2092_v8 = vor.u32 %v2620_v63, %v2089_v1  ;;  %v2432_v38 = vor.u32 %v2707_v22, %v2431_v21  ;;  %v2175_v39 = vld [vmem:[%s3839_s1 + $0x1e8] sm:$0xf] }
  0x3e   : > { %1030 = vmatmul.bf16.gmra.mxu0 %v3143_v44  ;;  %1054 = vmatmul.bf16.gmra.mxu1 %v3154_v50  ;;  %v2680_v4 = vld [vmem:[%s3839_s1 + $0x324] sm:$0xf]  ;;  %v2329_v5 = vld [vmem:[%s3839_s1 + $0x330] sm:$0xf0]  ;;  %v2204_v9 = vor.u32 %v2648_v2, %v2201_v3  ;;  %v1921_v43 = vld [vmem:[%s3014_s6 + $0x58] sm:$0xf0] }
  0x3f   : > { %1078 = vmatmul.bf16.gmra.mxu2 %v3156_v51  ;;  %1117 = vmatpush.bf16.msrb.mxu0 %v1980_v58  ;;  %v2584_v7 = vld [vmem:[%s3839_s1 + $0x24] sm:$0xf]  ;;  %v1945_v10 = vld [vmem:[%s3839_s1 + $0x30] sm:$0xf0]  ;;  %v2332_v13 = vor.u32 %v2680_v4, %v2329_v5  ;;  %v2287_v49 = vld [vmem:[%s3839_s1 + $0x2c8] sm:$0xf]  ;;  %v3271_v58 = vor.u32 %v2578_v24, %v1911_v23  ;;  %v3292_v3 = vor.u32 %v2577_v42, %v1921_v43 }
  0x40   : > { %1165 = vmatpush.bf16.msrb.mxu2 %v2236_v40  ;;  %1102 = vmatmul.bf16.gmra.mxu3 %v3164_v56  ;;  %v2616_v11 = vld [vmem:[%s3839_s1 + $0x124] sm:$0xf]  ;;  %v2073_v12 = vld [vmem:[%s3839_s1 + $0x130] sm:$0xf0]  ;;  %v1948_v20 = vor.u32 %v2584_v7, %v1945_v10  ;;  %v2643_v40 = vld [vmem:[%s3839_s1 + $0x1f4] sm:$0xf0] }
  0x41   : > { %1189 = vmatpush.bf16.msrb.mxu3 %v2364_v45  ;;  %1141 = vmatpush.bf16.msrb.mxu1 %v2108_v59  ;;  %v2644_v14 = vld [vmem:[%s3839_s1 + $0x204] sm:$0xf]  ;;  %v2185_v15 = vld [vmem:[%s3839_s1 + $0x210] sm:$0xf0]  ;;  %v2076_v25 = vor.u32 %v2616_v11, %v2073_v12  ;;  %v2671_v54 = vld [vmem:[%s3839_s1 + $0x2d4] sm:$0xf0]  ;;  %v2176_v59 = vor.u32 %v2643_v40, %v2175_v39 }
  0x42   : > { %v2676_v16 = vld [vmem:[%s3839_s1 + $0x304] sm:$0xf]  ;;  %v2313_v17 = vld [vmem:[%s3839_s1 + $0x310] sm:$0xf0]  ;;  %v2188_v26 = vor.u32 %v2644_v14, %v2185_v15  ;;  %v2415_v55 = vld [vmem:[%s3839_s1 + $0x3c8] sm:$0xf]  ;;  %v2288_v4 = vor.u32 %v2671_v54, %v2287_v49 }
  0x43   : > { %1118 = vmatpush.bf16.msrb.mxu0 %v1964_v6  ;;  %v2580_v27 = vld [vmem:[%s3839_s1 + $0x4] sm:$0xf]  ;;  %v1929_v28 = vld [vmem:[%s3839_s1 + $0x10] sm:$0xf0]  ;;  %v2316_v32 = vor.u32 %v2676_v16, %v2313_v17  ;;  %v2031_v61 = vld [vmem:[%s3839_s1 + $0xc8] sm:$0xf] }
  0x44   : > { %1166 = vmatpush.bf16.msrb.mxu2 %v2220_v60  ;;  %v2612_v29 = vld [vmem:[%s3839_s1 + $0x104] sm:$0xf]  ;;  %v1913_v31 = vld [vmem:[%s3014_s6 + $0x50] sm:$0xf0]  ;;  %v1932_v45 = vor.u32 %v2580_v27, %v1929_v28  ;;  %v2703_v60 = vld [vmem:[%s3839_s1 + $0x3d4] sm:$0xf0] }
  0x45   : > { %1190 = vmatpush.bf16.msrb.mxu3 %v2348_v0  ;;  %1142 = vmatpush.bf16.msrb.mxu1 %v2092_v8  ;;  %v2576_v30 = vld [vmem:[%s3014_s6 + $0x44] sm:$0xf]  ;;  %v2057_v33 = vld [vmem:[%s3839_s1 + $0x110] sm:$0xf0]  ;;  %v2607_v62 = vld [vmem:[%s3839_s1 + $0xd4] sm:$0xf0]  ;;  %v3284_v0 = vor.u32 %v2579_v41, %v1919_v37  ;;  %v2416_v5 = vor.u32 %v2703_v60, %v2415_v55 }
  0x46   : > { %v2060_v46 = vor.u32 %v2612_v29, %v2057_v33  ;;  %v3282_v63 = vor.u32 %v2576_v30, %v1913_v31  ;;  %v2159_v1 = vld [vmem:[%s3839_s1 + $0x1c8] sm:$0xf]  ;;  %v2639_v2 = vld [vmem:[%s3839_s1 + $0x1d4] sm:$0xf0]  ;;  %v2032_v6 = vor.u32 %v2607_v62, %v2031_v61 }
  0x47   : > { %1119 = vmatpush.bf16.msrb.mxu0 %v1948_v20  ;;  %v2271_v7 = vld [vmem:[%s3839_s1 + $0x2a8] sm:$0xf]  ;;  %v2667_v8 = vld [vmem:[%s3839_s1 + $0x2b4] sm:$0xf0] }
  0x48   : > { %1167 = vmatpush.bf16.msrb.mxu2 %v2204_v9  ;;  %v2160_v9 = vor.u32 %v2639_v2, %v2159_v1  ;;  %v2399_v10 = vld [vmem:[%s3839_s1 + $0x3a8] sm:$0xf]  ;;  %v2699_v11 = vld [vmem:[%s3839_s1 + $0x3b4] sm:$0xf0]  ;;  %v2272_v12 = vor.u32 %v2667_v8, %v2271_v7 }
  0x49   : > { %1191 = vmatpush.bf16.msrb.mxu3 %v2332_v13  ;;  %1143 = vmatpush.bf16.msrb.mxu1 %v2076_v25  ;;  %v2015_v13 = vld [vmem:[%s3839_s1 + $0xa8] sm:$0xf]  ;;  %v2603_v14 = vld [vmem:[%s3839_s1 + $0xb4] sm:$0xf0]  ;;  %v2400_v16 = vor.u32 %v2699_v11, %v2399_v10 }
  0x4a   : > { %v2143_v15 = vld [vmem:[%s3839_s1 + $0x1a8] sm:$0xf]  ;;  %v2016_v17 = vor.u32 %v2603_v14, %v2015_v13  ;;  %v2635_v18 = vld [vmem:[%s3839_s1 + $0x1b4] sm:$0xf0] }
  0x4b   : > { %1120 = vmatpush.bf16.msrb.mxu0 %v1932_v45  ;;  %v2255_v19 = vld [vmem:[%s3839_s1 + $0x288] sm:$0xf]  ;;  %v2663_v20 = vld [vmem:[%s3839_s1 + $0x294] sm:$0xf0]  ;;  %v2144_v21 = vor.u32 %v2635_v18, %v2143_v15 }
  0x4c   : > { %1168 = vmatpush.bf16.msrb.mxu2 %v2188_v26  ;;  %v2383_v22 = vld [vmem:[%s3839_s1 + $0x388] sm:$0xf]  ;;  %v2695_v23 = vld [vmem:[%s3839_s1 + $0x394] sm:$0xf0]  ;;  %v2256_v28 = vor.u32 %v2663_v20, %v2255_v19 }
  0x4d   : > { %1192 = vmatpush.bf16.msrb.mxu3 %v2316_v32  ;;  %1144 = vmatpush.bf16.msrb.mxu1 %v2060_v46  ;;  %v1999_v24 = vld [vmem:[%s3839_s1 + $0x88] sm:$0xf]  ;;  %v2599_v25 = vld [vmem:[%s3839_s1 + $0x94] sm:$0xf0]  ;;  %v2384_v29 = vor.u32 %v2695_v23, %v2383_v22 }
  0x4e   : > { %1035 = vmatmul.bf16.gmra.mxu0 %v3271_v58  ;;  %1059 = vmatmul.bf16.gmra.mxu1 %v3282_v63  ;;  %v2127_v26 = vld [vmem:[%s3839_s1 + $0x188] sm:$0xf]  ;;  %v2631_v27 = vld [vmem:[%s3839_s1 + $0x194] sm:$0xf0]  ;;  %v2000_v30 = vor.u32 %v2599_v25, %v1999_v24 }
  0x4f   : > { %1209 = vmatpush.bf16.msra.mxu0 %v2048_v48  ;;  %1083 = vmatmul.bf16.gmra.mxu2 %v3284_v0  ;;  %v2239_v31 = vld [vmem:[%s3839_s1 + $0x268] sm:$0xf]  ;;  %v2659_v32 = vld [vmem:[%s3839_s1 + $0x274] sm:$0xf0] }
  0x50   : > { %1257 = vmatpush.bf16.msra.mxu2 %v2304_v34  ;;  %1107 = vmatmul.bf16.gmra.mxu3 %v3292_v3  ;;  %v2367_v33 = vld [vmem:[%s3839_s1 + $0x368] sm:$0xf]  ;;  %v2128_v34 = vor.u32 %v2631_v27, %v2127_v26  ;;  %v2691_v35 = vld [vmem:[%s3839_s1 + $0x374] sm:$0xf0]  ;;  %v2240_v40 = vor.u32 %v2659_v32, %v2239_v31  ;;  %v2433_v32 = vld [vmem:[%s3839_s1 + $0x3f8] sm:$0xf0] }
  0x51   : > { %1281 = vmatpush.bf16.msra.mxu3 %v2432_v38  ;;  %1233 = vmatpush.bf16.msra.mxu1 %v2176_v59  ;;  %v1983_v36 = vld [vmem:[%s3839_s1 + $0x68] sm:$0xf]  ;;  %v2595_v37 = vld [vmem:[%s3839_s1 + $0x74] sm:$0xf0]  ;;  %v2368_v41 = vor.u32 %v2691_v35, %v2367_v33  ;;  %v2609_v33 = vld [vmem:[%s3839_s1 + $0xec] sm:$0xf] }
  0x52   : > { %v2111_v38 = vld [vmem:[%s3839_s1 + $0x168] sm:$0xf]  ;;  %v2627_v39 = vld [vmem:[%s3839_s1 + $0x174] sm:$0xf0]  ;;  %v1984_v42 = vor.u32 %v2595_v37, %v1983_v36  ;;  %v2641_v37 = vld [vmem:[%s3839_s1 + $0x1ec] sm:$0xf] }
  0x53   : > { %1210 = vmatpush.bf16.msra.mxu0 %v2032_v6  ;;  %v2223_v43 = vld [vmem:[%s3839_s1 + $0x248] sm:$0xf]  ;;  %v2655_v45 = vld [vmem:[%s3839_s1 + $0x254] sm:$0xf0]  ;;  %v2112_v46 = vor.u32 %v2627_v39, %v2111_v38  ;;  %v2177_v38 = vld [vmem:[%s3839_s1 + $0x1f8] sm:$0xf0] }
  0x54   : > { %1258 = vmatpush.bf16.msra.mxu2 %v2288_v4  ;;  %v2224_v48 = vor.u32 %v2655_v45, %v2223_v43  ;;  %v2351_v49 = vld [vmem:[%s3839_s1 + $0x348] sm:$0xf]  ;;  %v2687_v54 = vld [vmem:[%s3839_s1 + $0x354] sm:$0xf0]  ;;  %v2669_v39 = vld [vmem:[%s3839_s1 + $0x2cc] sm:$0xf] }
  0x55   : > { %1282 = vmatpush.bf16.msra.mxu3 %v2416_v5  ;;  %1234 = vmatpush.bf16.msra.mxu1 %v2160_v9  ;;  %v1967_v55 = vld [vmem:[%s3839_s1 + $0x48] sm:$0xf]  ;;  %v2352_v59 = vor.u32 %v2687_v54, %v2351_v49  ;;  %v2591_v60 = vld [vmem:[%s3839_s1 + $0x54] sm:$0xf0]  ;;  %v2417_v43 = vld [vmem:[%s3839_s1 + $0x3d8] sm:$0xf0] }
  0x56   : > { %v2095_v61 = vld [vmem:[%s3839_s1 + $0x148] sm:$0xf]  ;;  %v2623_v62 = vld [vmem:[%s3839_s1 + $0x154] sm:$0xf0]  ;;  %v1968_v1 = vor.u32 %v2591_v60, %v1967_v55  ;;  %v2033_v49 = vld [vmem:[%s3839_s1 + $0xd8] sm:$0xf0] }
  0x57   : > { %1211 = vmatpush.bf16.msra.mxu0 %v2016_v17  ;;  %v2096_v2 = vor.u32 %v2623_v62, %v2095_v61  ;;  %v2207_v4 = vld [vmem:[%s3839_s1 + $0x228] sm:$0xf]  ;;  %v2651_v5 = vld [vmem:[%s3839_s1 + $0x234] sm:$0xf0]  ;;  %v2637_v54 = vld [vmem:[%s3839_s1 + $0x1cc] sm:$0xf] }
  0x58   : > { %1259 = vmatpush.bf16.msra.mxu2 %v2272_v12  ;;  %v2335_v6 = vld [vmem:[%s3839_s1 + $0x328] sm:$0xf]  ;;  %v2208_v7 = vor.u32 %v2651_v5, %v2207_v4  ;;  %v2683_v8 = vld [vmem:[%s3839_s1 + $0x334] sm:$0xf0]  ;;  %v2665_v60 = vld [vmem:[%s3839_s1 + $0x2ac] sm:$0xf] }
  0x59   : > { %1283 = vmatpush.bf16.msra.mxu3 %v2400_v16  ;;  %1235 = vmatpush.bf16.msra.mxu1 %v2144_v21  ;;  %v1951_v9 = vld [vmem:[%s3839_s1 + $0x28] sm:$0xf]  ;;  %v2587_v10 = vld [vmem:[%s3839_s1 + $0x34] sm:$0xf0]  ;;  %v2336_v11 = vor.u32 %v2683_v8, %v2335_v6  ;;  %v2273_v61 = vld [vmem:[%s3839_s1 + $0x2b8] sm:$0xf0] }
  0x5a   : > { %v1952_v12 = vor.u32 %v2587_v10, %v1951_v9  ;;  %v2079_v13 = vld [vmem:[%s3839_s1 + $0x128] sm:$0xf]  ;;  %v2619_v14 = vld [vmem:[%s3839_s1 + $0x134] sm:$0xf0]  ;;  %v2276_v4 = vor.u32 %v2665_v60, %v2273_v61  ;;  %v2601_v6 = vld [vmem:[%s3839_s1 + $0xac] sm:$0xf] }
  0x5b   : > { %1212 = vmatpush.bf16.msra.mxu0 %v2000_v30  ;;  %v2191_v15 = vld [vmem:[%s3839_s1 + $0x208] sm:$0xf]  ;;  %v2080_v16 = vor.u32 %v2619_v14, %v2079_v13  ;;  %v2647_v17 = vld [vmem:[%s3839_s1 + $0x214] sm:$0xf0]  ;;  %v2705_v30 = vld [vmem:[%s3839_s1 + $0x3ec] sm:$0xf] }
  0x5c   : > { %1260 = vmatpush.bf16.msra.mxu2 %v2256_v28  ;;  %v2319_v18 = vld [vmem:[%s3839_s1 + $0x308] sm:$0xf]  ;;  %v2679_v19 = vld [vmem:[%s3839_s1 + $0x314] sm:$0xf0]  ;;  %v2192_v20 = vor.u32 %v2647_v17, %v2191_v15  ;;  %v2673_v28 = vld [vmem:[%s3839_s1 + $0x2ec] sm:$0xf]  ;;  %v2436_v35 = vor.u32 %v2705_v30, %v2433_v32 }
  0x5d   : > { %1284 = vmatpush.bf16.msra.mxu3 %v2384_v29  ;;  %1236 = vmatpush.bf16.msra.mxu1 %v2128_v34  ;;  %v1935_v21 = vld [vmem:[%s3839_s1 + $0x8] sm:$0xf]  ;;  %v2583_v22 = vld [vmem:[%s3839_s1 + $0x14] sm:$0xf0]  ;;  %v2320_v24 = vor.u32 %v2679_v19, %v2319_v18  ;;  %v2305_v29 = vld [vmem:[%s3839_s1 + $0x2f8] sm:$0xf0] }
  0x5e   : > { %1121 = vmatmul.bf16.vlgmr.msrb.gmra.mxu0 %v3034_v47  ;;  %1145 = vmatmul.bf16.vlgmr.msrb.gmra.mxu1 %v3039_v52  ;;  %v2063_v23 = vld [vmem:[%s3839_s1 + $0x108] sm:$0xf]  ;;  %v2615_v25 = vld [vmem:[%s3839_s1 + $0x114] sm:$0xf0]  ;;  %v1936_v26 = vor.u32 %v2583_v22, %v1935_v21  ;;  %v2308_v31 = vor.u32 %v2673_v28, %v2305_v29  ;;  %v2049_v34 = vld [vmem:[%s3839_s1 + $0xf8] sm:$0xf0] }
  0x5f   : > { %1213 = vmatpush.bf16.msra.mxu0 %v1984_v42  ;;  %1169 = vmatmul.bf16.vlgmr.msrb.gmra.mxu2 %v3041_v53  ;;  %v2064_v27 = vor.u32 %v2615_v25, %v2063_v23  ;;  %v2052_v36 = vor.u32 %v2609_v33, %v2049_v34  ;;  %v2701_v42 = vld [vmem:[%s3839_s1 + $0x3cc] sm:$0xf]  ;;  %v2145_v10 = vld [vmem:[%s3839_s1 + $0x1b8] sm:$0xf0] }
  0x60   : > { %1261 = vmatpush.bf16.msra.mxu2 %v2240_v40  ;;  %1193 = vmatmul.bf16.vlgmr.msrb.gmra.mxu3 %v3048_v57  ;;  %v2180_v40 = vor.u32 %v2641_v37, %v2177_v38  ;;  %v2633_v8 = vld [vmem:[%s3839_s1 + $0x1ac] sm:$0xf]  ;;  %v2001_v19 = vld [vmem:[%s3839_s1 + $0x98] sm:$0xf0] }
  0x61   : > { %1285 = vmatpush.bf16.msra.mxu3 %v2368_v41  ;;  %1237 = vmatpush.bf16.msra.mxu1 %v2112_v46  ;;  %v2289_v41 = vld [vmem:[%s3839_s1 + $0x2d8] sm:$0xf0]  ;;  %v2420_v46 = vor.u32 %v2701_v42, %v2417_v43  ;;  %v2148_v13 = vor.u32 %v2633_v8, %v2145_v10  ;;  %v2693_v15 = vld [vmem:[%s3839_s1 + $0x38c] sm:$0xf] }
  0x62   : > { %v2292_v45 = vor.u32 %v2669_v39, %v2289_v41  ;;  %v2597_v17 = vld [vmem:[%s3839_s1 + $0x8c] sm:$0xf]  ;;  %v2129_v21 = vld [vmem:[%s3839_s1 + $0x198] sm:$0xf0] }
  0x63   : > { %1214 = vmatpush.bf16.msra.mxu0 %v1968_v1  ;;  %v2697_v1 = vld [vmem:[%s3839_s1 + $0x3ac] sm:$0xf]  ;;  %v2004_v22 = vor.u32 %v2597_v17, %v2001_v19  ;;  %v2241_v25 = vld [vmem:[%s3839_s1 + $0x278] sm:$0xf0] }
  0x64   : > { %1262 = vmatpush.bf16.msra.mxu2 %v2224_v48  ;;  %v2605_v48 = vld [vmem:[%s3839_s1 + $0xcc] sm:$0xf]  ;;  %v2369_v28 = vld [vmem:[%s3839_s1 + $0x378] sm:$0xf0] }
  0x65   : > { %1286 = vmatpush.bf16.msra.mxu3 %v2352_v59  ;;  %1238 = vmatpush.bf16.msra.mxu1 %v2096_v2  ;;  %v2036_v55 = vor.u32 %v2605_v48, %v2033_v49  ;;  %v2161_v59 = vld [vmem:[%s3839_s1 + $0x1d8] sm:$0xf0]  ;;  %v2593_v29 = vld [vmem:[%s3839_s1 + $0x6c] sm:$0xf] }
  0x66   : > { %v2164_v62 = vor.u32 %v2637_v54, %v2161_v59  ;;  %v2401_v2 = vld [vmem:[%s3839_s1 + $0x3b8] sm:$0xf0]  ;;  %v2625_v32 = vld [vmem:[%s3839_s1 + $0x16c] sm:$0xf] }
  0x67   : > { %1215 = vmatpush.bf16.msra.mxu0 %v1952_v12  ;;  %v2404_v5 = vor.u32 %v2697_v1, %v2401_v2  ;;  %v2257_v12 = vld [vmem:[%s3839_s1 + $0x298] sm:$0xf0]  ;;  %v2685_v39 = vld [vmem:[%s3839_s1 + $0x34c] sm:$0xf] }
  0x68   : > { %1263 = vmatpush.bf16.msra.mxu2 %v2208_v7  ;;  %v2017_v7 = vld [vmem:[%s3839_s1 + $0xb8] sm:$0xf0]  ;;  %v2589_v41 = vld [vmem:[%s3839_s1 + $0x4c] sm:$0xf] }
  0x69   : > { %1287 = vmatpush.bf16.msra.mxu3 %v2336_v11  ;;  %1239 = vmatpush.bf16.msra.mxu1 %v2080_v16  ;;  %v2020_v9 = vor.u32 %v2601_v6, %v2017_v7  ;;  %v2661_v11 = vld [vmem:[%s3839_s1 + $0x28c] sm:$0xf]  ;;  %v2385_v16 = vld [vmem:[%s3839_s1 + $0x398] sm:$0xf0] }
  0x6a   : > { %v2260_v14 = vor.u32 %v2661_v11, %v2257_v12  ;;  %v2388_v18 = vor.u32 %v2693_v15, %v2385_v16  ;;  %v1985_v30 = vld [vmem:[%s3839_s1 + $0x78] sm:$0xf0]  ;;  %v2649_v54 = vld [vmem:[%s3839_s1 + $0x22c] sm:$0xf] }
  0x6b   : > { %1216 = vmatpush.bf16.msra.mxu0 %v1936_v26  ;;  %v2689_v26 = vld [vmem:[%s3839_s1 + $0x36c] sm:$0xf]  ;;  %v2113_v33 = vld [vmem:[%s3839_s1 + $0x178] sm:$0xf0]  ;;  %v1988_v34 = vor.u32 %v2593_v29, %v1985_v30  ;;  %v2722_v30 = vld [vmem:[%s3840_s2 + $0x70] sm:$0xff] }
  0x6c   : > { %1264 = vmatpush.bf16.msra.mxu2 %v2192_v20  ;;  %v2629_v20 = vld [vmem:[%s3839_s1 + $0x18c] sm:$0xf]  ;;  %v2225_v37 = vld [vmem:[%s3839_s1 + $0x258] sm:$0xf0] }
  0x6d   : > { %1288 = vmatpush.bf16.msra.mxu3 %v2320_v24  ;;  %1240 = vmatpush.bf16.msra.mxu1 %v2064_v27  ;;  %v2132_v23 = vor.u32 %v2629_v20, %v2129_v21  ;;  %v2657_v24 = vld [vmem:[%s3839_s1 + $0x26c] sm:$0xf]  ;;  %v1969_v43 = vld [vmem:[%s3839_s1 + $0x58] sm:$0xf0] }
  0x6e   : > { %1126 = vmatmul.bf16.gmra.mxu0 %v3143_v44  ;;  %1150 = vmatmul.bf16.gmra.mxu1 %v3154_v50  ;;  %v2244_v27 = vor.u32 %v2657_v24, %v2241_v25  ;;  %v1972_v48 = vor.u32 %v2589_v41, %v1969_v43  ;;  %v2681_v59 = vld [vmem:[%s3839_s1 + $0x32c] sm:$0xf]  ;;  %v2337_v61 = vld [vmem:[%s3839_s1 + $0x338] sm:$0xf0] }
  0x6f   : > { %1174 = vmatmul.bf16.gmra.mxu2 %v3156_v51  ;;  %1305 = vmatpush.bf16.msrb.mxu0 %v2052_v36  ;;  %v2653_v36 = vld [vmem:[%s3839_s1 + $0x24c] sm:$0xf]  ;;  %v1953_v1 = vld [vmem:[%s3839_s1 + $0x38] sm:$0xf0]  ;;  %v2340_v2 = vor.u32 %v2681_v59, %v2337_v61 }
  0x70   : > { %1198 = vmatmul.bf16.gmra.mxu3 %v3164_v56  ;;  %1353 = vmatpush.bf16.msrb.mxu2 %v2308_v31  ;;  %v2372_v31 = vor.u32 %v2689_v26, %v2369_v28  ;;  %v2228_v38 = vor.u32 %v2653_v36, %v2225_v37  ;;  %v2081_v6 = vld [vmem:[%s3839_s1 + $0x138] sm:$0xf0]  ;;  %v2645_v7 = vld [vmem:[%s3839_s1 + $0x20c] sm:$0xf]  ;;  %v2714_v26 = vld [vmem:[%s3840_s2 + $0x30] sm:$0xff] }
  0x71   : > { %1377 = vmatpush.bf16.msrb.mxu3 %v2436_v35  ;;  %1329 = vmatpush.bf16.msrb.mxu1 %v2180_v40  ;;  %v2116_v35 = vor.u32 %v2625_v32, %v2113_v33  ;;  %v2353_v40 = vld [vmem:[%s3839_s1 + $0x358] sm:$0xf0]  ;;  %v2677_v11 = vld [vmem:[%s3839_s1 + $0x30c] sm:$0xf] }
  0x72   : > { %v2356_v42 = vor.u32 %v2685_v39, %v2353_v40  ;;  %v2321_v12 = vld [vmem:[%s3839_s1 + $0x318] sm:$0xf0]  ;;  %v2613_v16 = vld [vmem:[%s3839_s1 + $0x10c] sm:$0xf] }
  0x73   : > { %1306 = vmatpush.bf16.msrb.mxu0 %v2036_v55  ;;  %v2209_v55 = vld [vmem:[%s3839_s1 + $0x238] sm:$0xf0]  ;;  %v2713_v29 = vld [vmem:[%s3840_s2 + $0x28] sm:$0xff] }
  0x74   : > { %1354 = vmatpush.bf16.msrb.mxu2 %v2292_v45  ;;  %v2621_v45 = vld [vmem:[%s3839_s1 + $0x14c] sm:$0xf]  ;;  %v2212_v60 = vor.u32 %v2649_v54, %v2209_v55  ;;  %v1937_v15 = vld [vmem:[%s3839_s1 + $0x18] sm:$0xf0]  ;;  %v2716_v55 = vld [vmem:[%s3840_s2 + $0x40] sm:$0xff] }
  0x75   : > { %1378 = vmatpush.bf16.msrb.mxu3 %v2420_v46  ;;  %1330 = vmatpush.bf16.msrb.mxu1 %v2164_v62  ;;  %v2097_v46 = vld [vmem:[%s3839_s1 + $0x158] sm:$0xf0]  ;;  %v2585_v62 = vld [vmem:[%s3839_s1 + $0x2c] sm:$0xf] }
  0x76   : > { %v2100_v49 = vor.u32 %v2621_v45, %v2097_v46  ;;  %v2065_v17 = vld [vmem:[%s3839_s1 + $0x118] sm:$0xf0] }
  0x77   : > { %1307 = vmatpush.bf16.msrb.mxu0 %v2020_v9  ;;  %v2193_v9 = vld [vmem:[%s3839_s1 + $0x218] sm:$0xf0]  ;;  %v2068_v19 = vor.u32 %v2613_v16, %v2065_v17 }
  0x78   : > { %1355 = vmatpush.bf16.msrb.mxu2 %v2276_v4  ;;  %v1956_v4 = vor.u32 %v2585_v62, %v1953_v1  ;;  %v2196_v10 = vor.u32 %v2645_v7, %v2193_v9  ;;  %v2711_v37 = vld [vmem:[%s3840_s2 + $0x18] sm:$0xff] }
  0x79   : > { %1379 = vmatpush.bf16.msrb.mxu3 %v2404_v5  ;;  %1331 = vmatpush.bf16.msrb.mxu1 %v2148_v13  ;;  %v2617_v5 = vld [vmem:[%s3839_s1 + $0x12c] sm:$0xf] }
  0x7a   : > { %v2084_v8 = vor.u32 %v2617_v5, %v2081_v6  ;;  %v2581_v13 = vld [vmem:[%s3839_s1 + $0xc] sm:$0xf] }
  0x7b   : > { %1308 = vmatpush.bf16.msrb.mxu0 %v2004_v22  ;;  %v2715_v22 = vld [vmem:[%s3840_s2 + $0x38] sm:$0xff] }
  0x7c   : > { %1356 = vmatpush.bf16.msrb.mxu2 %v2260_v14  ;;  %v2324_v14 = vor.u32 %v2677_v11, %v2321_v12 }
  0x7d   : > { %1380 = vmatpush.bf16.msrb.mxu3 %v2388_v18  ;;  %1332 = vmatpush.bf16.msrb.mxu1 %v2132_v23  ;;  %v1940_v18 = vor.u32 %v2581_v13, %v1937_v15 }
  0x7e   : > { %1131 = vmatmul.bf16.gmra.mxu0 %v3271_v58  ;;  %1155 = vmatmul.bf16.gmra.mxu1 %v3282_v63 }
  0x7f   : > { %1179 = vmatmul.bf16.gmra.mxu2 %v3284_v0  ;;  %1309 = vmatpush.bf16.msrb.mxu0 %v1988_v34  ;;  %v2712_v34 = vld [vmem:[%s3840_s2 + $0x20] sm:$0xff] }
  0x80   : > { %1203 = vmatmul.bf16.gmra.mxu3 %v3292_v3  ;;  %1357 = vmatpush.bf16.msrb.mxu2 %v2244_v27  ;;  %v2723_v27 = vld [vmem:[%s3840_s2 + $0x78] sm:$0xff] }
  0x81   : > { %1381 = vmatpush.bf16.msrb.mxu3 %v2372_v31  ;;  %1333 = vmatpush.bf16.msrb.mxu1 %v2116_v35  ;;  %v2721_v35 = vld [vmem:[%s3840_s2 + $0x68] sm:$0xff] }
  0x83   : > { %1310 = vmatpush.bf16.msrb.mxu0 %v1972_v48  ;;  %v2708_v48 = vld [vmem:[%s3840_s2] sm:$0xff] }
  0x84   : > { %1358 = vmatpush.bf16.msrb.mxu2 %v2228_v38  ;;  %v2720_v38 = vld [vmem:[%s3840_s2 + $0x60] sm:$0xff] }
  0x85   : > { %1382 = vmatpush.bf16.msrb.mxu3 %v2356_v42  ;;  %1334 = vmatpush.bf16.msrb.mxu1 %v2100_v49  ;;  %v2718_v42 = vld [vmem:[%s3840_s2 + $0x50] sm:$0xff]  ;;  %v2717_v49 = vld [vmem:[%s3840_s2 + $0x48] sm:$0xff] }
  0x87   : > { %1311 = vmatpush.bf16.msrb.mxu0 %v1956_v4 }
  0x88   : > { %1359 = vmatpush.bf16.msrb.mxu2 %v2212_v60 }
  0x89   : > { %1383 = vmatpush.bf16.msrb.mxu3 %v2340_v2  ;;  %1335 = vmatpush.bf16.msrb.mxu1 %v2084_v8 }
  0x8b   : > { %1312 = vmatpush.bf16.msrb.mxu0 %v1940_v18 }
  0x8c   : > { %1360 = vmatpush.bf16.msrb.mxu2 %v2196_v10  ;;  %v2731_v10 = vld [vmem:[%s3840_s2 + $0xb8] sm:$0xff] }
  0x8d   : > { %1384 = vmatpush.bf16.msrb.mxu3 %v2324_v14  ;;  %1336 = vmatpush.bf16.msrb.mxu1 %v2068_v19 }
  0x8e   : > { %1217 = vmatmul.bf16.vlgmr.msra.gmra.mxu0 %v3034_v47  ;;  %1241 = vmatmul.bf16.vlgmr.msra.gmra.mxu1 %v3039_v52 }
  0x8f   : > { %1265 = vmatmul.bf16.vlgmr.msra.gmra.mxu2 %v3041_v53  ;;  %1693 = vmatpush.bf16.msra.mxu0 %v2715_v22 }
  0x90   : > { %1289 = vmatmul.bf16.vlgmr.msra.gmra.mxu3 %v3048_v57  ;;  %1741 = vmatpush.bf16.msra.mxu2 %v2731_v10 }
  0x91   : > { %1717 = vmatpush.bf16.msra.mxu1 %v2723_v27 }
  0x93   : > { %1694 = vmatpush.bf16.msra.mxu0 %v2714_v26 }
  0x95   : > { %1718 = vmatpush.bf16.msra.mxu1 %v2722_v30 }
  0x97   : > { %1695 = vmatpush.bf16.msra.mxu0 %v2713_v29 }
  0x99   : > { %1719 = vmatpush.bf16.msra.mxu1 %v2721_v35 }
  0x9b   : > { %1696 = vmatpush.bf16.msra.mxu0 %v2712_v34 }
  0x9d   : > { %1720 = vmatpush.bf16.msra.mxu1 %v2720_v38 }
  0x9e   : > { %1222 = vmatmul.bf16.gmra.mxu0 %v3143_v44  ;;  %1246 = vmatmul.bf16.gmra.mxu1 %v3154_v50 }
  0x9f   : > { %1270 = vmatmul.bf16.gmra.mxu2 %v3156_v51  ;;  %1697 = vmatpush.bf16.msra.mxu0 %v2711_v37 }
  0xa0   : > { %1294 = vmatmul.bf16.gmra.mxu3 %v3164_v56 }
  0xab   : > { %v3654_v20 = vpop.f32.mrf.mxu0  ;;  %v3656_v21 = vpop.f32.mrf.mxu1 }
  0xac   : > { %v1051_v2 = vadd.f32 %v3656_v21, %v3654_v20  ;;  %v2729_v20 = vld [vmem:[%s3840_s2 + $0xa8] sm:$0xff] }
  0xae   : > { %1227 = vmatmul.bf16.gmra.mxu0 %v3271_v58  ;;  %1251 = vmatmul.bf16.gmra.mxu1 %v3282_v63 }
  0xaf   : > { %1275 = vmatmul.bf16.gmra.mxu2 %v3284_v0 }
  0xb0   : > { %1299 = vmatmul.bf16.gmra.mxu3 %v3292_v3 }
  0xb2   : > { %v3665_v23 = vpop.f32.mrf.mxu2 }
  0xb3   : > { %v3667_v24 = vpop.f32.mrf.mxu3  ;;  %v1028_v25 = vpop.f32.mrf.mxu0  ;;  %v1075_v5 = vadd.f32 %v3665_v23, %v1051_v2 }
  0xb4   : > { %v1052_v28 = vpop.f32.mrf.mxu1 }
  0xb5   : > { %v1053_v4 = vadd.f32 %v1052_v28, %v1028_v25  ;;  %v2728_v28 = vld [vmem:[%s3840_s2 + $0xa0] sm:$0xff] }
  0xba   : > { %v1076_v31 = vpop.f32.mrf.mxu2 }
  0xbb   : > { %v1100_v32 = vpop.f32.mrf.mxu3  ;;  %v3681_v33 = vpop.f32.mrf.mxu0 }
  0xbc   : > { %v3689_v36 = vpop.f32.mrf.mxu1 }
  0xbe   : > { %1313 = vmatmul.bf16.vlgmr.msrb.gmra.mxu0 %v3034_v47  ;;  %1337 = vmatmul.bf16.vlgmr.msrb.gmra.mxu1 %v3039_v52  ;;  %v2710_v52 = vld [vmem:[%s3840_s2 + $0x10] sm:$0xff] }
  0xbf   : > { %1361 = vmatmul.bf16.vlgmr.msrb.gmra.mxu2 %v3041_v53  ;;  %v2719_v53 = vld [vmem:[%s3840_s2 + $0x58] sm:$0xff]  ;;  %1698 = vmatpush.bf16.msra.mxu0 %v2710_v52 }
  0xc0   : > { %1385 = vmatmul.bf16.vlgmr.msrb.gmra.mxu3 %v3048_v57  ;;  %1721 = vmatpush.bf16.msra.mxu1 %v2719_v53  ;;  %v2709_v57 = vld [vmem:[%s3840_s2 + $0x8] sm:$0xff] }
  0xc2   : > { %v3701_v39 = vpop.f32.mrf.mxu2 }
  0xc3   : > { %v3703_v40 = vpop.f32.mrf.mxu3  ;;  %v3705_v47 = vpop.f32.mrf.mxu0  ;;  %1699 = vmatpush.bf16.msra.mxu0 %v2709_v57 }
  0xc4   : > { %v3713_v41 = vpop.f32.mrf.mxu1  ;;  %1722 = vmatpush.bf16.msra.mxu1 %v2718_v42 }
  0xc5   : > { %v1058_v25 = vadd.f32 %v3713_v41, %v3705_v47 }
  0xc7   : > { %1700 = vmatpush.bf16.msra.mxu0 %v2708_v48 }
  0xc8   : > { %1723 = vmatpush.bf16.msra.mxu1 %v2717_v49 }
  0xca   : > { %v1081_v43 = vpop.f32.mrf.mxu2 }
  0xcb   : > { %v3721_v45 = vpop.f32.mrf.mxu3  ;;  %v3723_v46 = vpop.f32.mrf.mxu0  ;;  %v1082_v29 = vadd.f32 %v1081_v43, %v1058_v25 }
  0xcc   : > { %v3731_v54 = vpop.f32.mrf.mxu1  ;;  %1724 = vmatpush.bf16.msra.mxu1 %v2716_v55 }
  0xcd   : > { %v1106_v37 = vadd.f32 %v3721_v45, %v1082_v29  ;;  %v2725_v45 = vld [vmem:[%s3840_s2 + $0x88] sm:$0xff]  ;;  %v1061_v2 = vadd.f32 %v3731_v54, %v3723_v46  ;;  %v2736_v29 = vld [vmem:[%s3840_s2 + $0xe0] sm:$0xff] }
  0xce   : > { %1318 = vmatmul.bf16.gmra.mxu0 %v3143_v44  ;;  %1342 = vmatmul.bf16.gmra.mxu1 %v3154_v50 }
  0xcf   : > { %1366 = vmatmul.bf16.gmra.mxu2 %v3156_v51  ;;  %v1413_v53 = vmul.f32 %v1106_v37, %v1106_v37 }
  0xd0   : > { %1390 = vmatmul.bf16.gmra.mxu3 %v3164_v56  ;;  %v1077_v56 = vadd.f32 %v1076_v31, %v1053_v4 }
  0xd2   : > { %v3740_v59 = vpop.f32.mrf.mxu2  ;;  %v1101_v11 = vadd.f32 %v1100_v32, %v1077_v56 }
  0xd3   : > { %v3742_v60 = vpop.f32.mrf.mxu3  ;;  %v3744_v61 = vpop.f32.mrf.mxu0 }
  0xd4   : > { %v3746_v62 = vpop.f32.mrf.mxu1 }
  0xd5   : > { %v1063_v4 = vadd.f32 %v3746_v62, %v3744_v61 }
  0xda   : > { %v3748_v44 = vpop.f32.mrf.mxu2 }
  0xdb   : > { %v3750_v50 = vpop.f32.mrf.mxu3  ;;  %v1122_v51 = vpop.f32.mrf.mxu0 }
  0xdc   : > { %v1146_v1 = vpop.f32.mrf.mxu1 }
  0xdd   : > { %v1147_v7 = vadd.f32 %v1146_v1, %v1122_v51 }
  0xde   : > { %1323 = vmatmul.bf16.gmra.mxu0 %v3271_v58  ;;  %1347 = vmatmul.bf16.gmra.mxu1 %v3282_v63  ;;  %v1099_v58 = vadd.f32 %v3667_v24, %v1075_v5  ;;  %v1056_v24 = vadd.f32 %v3689_v36, %v3681_v33  ;;  %v2727_v36 = vld [vmem:[%s3840_s2 + $0x98] sm:$0xff] }
  0xdf   : > { %1371 = vmatmul.bf16.gmra.mxu2 %v3284_v0  ;;  %v2730_v0 = vld [vmem:[%s3840_s2 + $0xb0] sm:$0xff] }
  0xe0   : > { %1395 = vmatmul.bf16.gmra.mxu3 %v3292_v3  ;;  %v1405_v3 = vmul.f32 %v1101_v11, %v1101_v11  ;;  %1742 = vmatpush.bf16.msra.mxu2 %v2730_v0  ;;  %v1401_v14 = vmul.f32 %v1099_v58, %v1099_v58  ;;  %v1080_v31 = vadd.f32 %v3701_v39, %v1056_v24  ;;  %v2726_v39 = vld [vmem:[%s3840_s2 + $0x90] sm:$0xff] }
  0xe2   : > { %v1170_v6 = vpop.f32.mrf.mxu2  ;;  %v1425_v21 = vpack.c.bf16 %v1405_v3, %v1401_v14  ;;  %v1104_v47 = vadd.f32 %v3703_v40, %v1080_v31 }
  0xe3   : > { %v1194_v8 = vpop.f32.mrf.mxu3  ;;  %v1124_v9 = vpop.f32.mrf.mxu0  ;;  %v1171_v63 = vadd.f32 %v1170_v6, %v1147_v7  ;;  %v2724_v6 = vld [vmem:[%s3840_s2 + $0x80] sm:$0xff]  ;;  %v1087_v7 = vadd.f32 %v3748_v44, %v1063_v4 }
  0xe4   : > { %v1148_v12 = vpop.f32.mrf.mxu1  ;;  %1743 = vmatpush.bf16.msra.mxu2 %v2729_v20  ;;  %v1409_v57 = vmul.f32 %v1104_v47, %v1104_v47 }
  0xe5   : > { %v1149_v13 = vadd.f32 %v1148_v12, %v1124_v9  ;;  %v1195_v16 = vadd.f32 %v1194_v8, %v1171_v63  ;;  %v1085_v9 = vadd.f32 %v3740_v59, %v1061_v2  ;;  %v1111_v54 = vadd.f32 %v3750_v50, %v1087_v7  ;;  %v2739_v63 = vld [vmem:[%s3840_s2 + $0xf8] sm:$0xff]  ;;  %v2738_v59 = vld [vmem:[%s3840_s2 + $0xf0] sm:$0xff] }
  0xe6   : > { %v1429_v40 = vpack.c.bf16 %v1413_v53, %v1409_v57  ;;  %1765 = vmatpush.bf16.msra.mxu3 %v2739_v63 }
  0xe7   : > { %v1402_v26 = vmul.f32 %v1195_v16, %v1195_v16  ;;  %v1109_v62 = vadd.f32 %v3742_v60, %v1085_v9  ;;  %v1421_v44 = vmul.f32 %v1111_v54, %v1111_v54 }
  0xe8   : > { %1744 = vmatpush.bf16.msra.mxu2 %v2728_v28 }
  0xe9   : > { %v1417_v3 = vmul.f32 %v1109_v62, %v1109_v62 }
  0xea   : > { %v1172_v15 = vpop.f32.mrf.mxu2  ;;  %1766 = vmatpush.bf16.msra.mxu3 %v2738_v59 }
  0xeb   : > { %v1173_v17 = vadd.f32 %v1172_v15, %v1149_v13  ;;  %v1196_v18 = vpop.f32.mrf.mxu3  ;;  %v1127_v19 = vpop.f32.mrf.mxu0  ;;  %v1433_v60 = vpack.c.bf16 %v1421_v44, %v1417_v3 }
  0xec   : > { %v1151_v22 = vpop.f32.mrf.mxu1  ;;  %1745 = vmatpush.bf16.msra.mxu2 %v2727_v36 }
  0xed   : > { %v1197_v23 = vadd.f32 %v1196_v18, %v1173_v17  ;;  %v1152_v34 = vadd.f32 %v1151_v22, %v1127_v19  ;;  %v2737_v22 = vld [vmem:[%s3840_s2 + $0xe8] sm:$0xff] }
  0xee   : > { %1701 = vmatmul.bf16.vlgmr.msra.gmra.mxu0 %v1425_v21  ;;  %1767 = vmatpush.bf16.msra.mxu3 %v2737_v22 }
  0xef   : > { %v1406_v27 = vmul.f32 %v1197_v23, %v1197_v23 }
  0xf0   : > { %1746 = vmatpush.bf16.msra.mxu2 %v2726_v39  ;;  %v2735_v39 = vld [vmem:[%s3840_s2 + $0xd8] sm:$0xff] }
  0xf1   : > { %v1426_v30 = vpack.c.bf16 %v1406_v27, %v1402_v26 }
  0xf2   : > { %v1175_v32 = vpop.f32.mrf.mxu2  ;;  %1768 = vmatpush.bf16.msra.mxu3 %v2736_v29 }
  0xf3   : > { %v1199_v35 = vpop.f32.mrf.mxu3  ;;  %1725 = vmatmul.bf16.vlgmr.msra.gmra.mxu1 %v1426_v30  ;;  %v1129_v33 = vpop.f32.mrf.mxu0  ;;  %v1176_v52 = vadd.f32 %v1175_v32, %v1152_v34 }
  0xf4   : > { %v1153_v38 = vpop.f32.mrf.mxu1  ;;  %1747 = vmatpush.bf16.msra.mxu2 %v2725_v45 }
  0xf5   : > { %v1154_v41 = vadd.f32 %v1153_v38, %v1129_v33  ;;  %v1200_v43 = vadd.f32 %v1199_v35, %v1176_v52 }
  0xf6   : > { %1769 = vmatpush.bf16.msra.mxu3 %v2735_v39 }
  0xf7   : > { %v1410_v56 = vmul.f32 %v1200_v43, %v1200_v43  ;;  %v2734_v43 = vld [vmem:[%s3840_s2 + $0xd0] sm:$0xff] }
  0xf8   : > { %1748 = vmatpush.bf16.msra.mxu2 %v2724_v6 }
  0xfa   : > { %v1177_v42 = vpop.f32.mrf.mxu2  ;;  %1770 = vmatpush.bf16.msra.mxu3 %v2734_v43 }
  0xfb   : > { %v1178_v48 = vadd.f32 %v1177_v42, %v1154_v41  ;;  %v1201_v49 = vpop.f32.mrf.mxu3  ;;  %v1132_v55 = vpop.f32.mrf.mxu0 }
  0xfc   : > { %v1156_v51 = vpop.f32.mrf.mxu1 }
  0xfd   : > { %v1202_v1 = vadd.f32 %v1201_v49, %v1178_v48  ;;  %v1157_v11 = vadd.f32 %v1156_v51, %v1132_v55  ;;  %v2733_v55 = vld [vmem:[%s3840_s2 + $0xc8] sm:$0xff] }
  0xfe   : > { %1706 = vmatmul.bf16.gmra.mxu0 %v1429_v40  ;;  %1771 = vmatpush.bf16.msra.mxu3 %v2733_v55 }
  0xff   : > { %v1414_v5 = vmul.f32 %v1202_v1, %v1202_v1 }
 0x101   : > { %v1430_v8 = vpack.c.bf16 %v1414_v5, %v1410_v56 }
 0x102   : > { %v1180_v10 = vpop.f32.mrf.mxu2 }
 0x103   : > { %v1204_v12 = vpop.f32.mrf.mxu3  ;;  %1730 = vmatmul.bf16.gmra.mxu1 %v1430_v8  ;;  %v1134_v46 = vpop.f32.mrf.mxu0  ;;  %v1181_v58 = vadd.f32 %v1180_v10, %v1157_v11  ;;  %v2732_v8 = vld [vmem:[%s3840_s2 + $0xc0] sm:$0xff] }
 0x104   : > { %v1158_v61 = vpop.f32.mrf.mxu1  ;;  %1772 = vmatpush.bf16.msra.mxu3 %v2732_v8 }
 0x105   : > { %v1159_v0 = vadd.f32 %v1158_v61, %v1134_v46  ;;  %v1205_v14 = vadd.f32 %v1204_v12, %v1181_v58 }
 0x107   : > { %v1418_v19 = vmul.f32 %v1205_v14, %v1205_v14 }
 0x10a   : > { %v1182_v13 = vpop.f32.mrf.mxu2 }
 0x10b   : > { %v1183_v15 = vadd.f32 %v1182_v13, %v1159_v0  ;;  %v1206_v50 = vpop.f32.mrf.mxu3  ;;  %v1218_v16 = vpop.f32.mrf.mxu0 }
 0x10c   : > { %v1242_v17 = vpop.f32.mrf.mxu1 }
 0x10d   : > { %v1207_v18 = vadd.f32 %v1206_v50, %v1183_v15  ;;  %v1243_v24 = vadd.f32 %v1242_v17, %v1218_v16 }
 0x10e   : > { %1711 = vmatmul.bf16.gmra.mxu0 %v1433_v60 }
 0x10f   : > { %v1422_v20 = vmul.f32 %v1207_v18, %v1207_v18 }
 0x111   : > { %v1434_v21 = vpack.c.bf16 %v1422_v20, %v1418_v19 }
 0x112   : > { %v1266_v23 = vpop.f32.mrf.mxu2 }
 0x113   : > { %v1290_v25 = vpop.f32.mrf.mxu3  ;;  %1735 = vmatmul.bf16.gmra.mxu1 %v1434_v21  ;;  %v1220_v26 = vpop.f32.mrf.mxu0  ;;  %v1267_v28 = vadd.f32 %v1266_v23, %v1243_v24 }
 0x114   : > { %v1244_v27 = vpop.f32.mrf.mxu1 }
 0x115   : > { %v1245_v30 = vadd.f32 %v1244_v27, %v1220_v26  ;;  %v1291_v32 = vadd.f32 %v1290_v25, %v1267_v28 }
 0x117   : > { %v1403_v38 = vmul.f32 %v1291_v32, %v1291_v32 }
 0x11a   : > { %v1268_v31 = vpop.f32.mrf.mxu2 }
 0x11b   : > { %v1269_v34 = vadd.f32 %v1268_v31, %v1245_v30  ;;  %v1292_v35 = vpop.f32.mrf.mxu3  ;;  %v1223_v33 = vpop.f32.mrf.mxu0 }
 0x11c   : > { %v1247_v36 = vpop.f32.mrf.mxu1 }
 0x11d   : > { %v1293_v37 = vadd.f32 %v1292_v35, %v1269_v34  ;;  %v1248_v41 = vadd.f32 %v1247_v36, %v1223_v33 }
 0x11f   : > { %v1407_v47 = vmul.f32 %v1293_v37, %v1293_v37 }
 0x121   : > { %v1427_v52 = vpack.c.bf16 %v1407_v47, %v1403_v38 }
 0x122   : > { %v1271_v53 = vpop.f32.mrf.mxu2 }
 0x123   : > { %v1295_v57 = vpop.f32.mrf.mxu3  ;;  %1749 = vmatmul.bf16.vlgmr.msra.gmra.mxu2 %v1427_v52  ;;  %v1225_v42 = vpop.f32.mrf.mxu0  ;;  %v1272_v49 = vadd.f32 %v1271_v53, %v1248_v41 }
 0x124   : > { %v1249_v48 = vpop.f32.mrf.mxu1 }
 0x125   : > { %v1250_v45 = vadd.f32 %v1249_v48, %v1225_v42  ;;  %v1296_v40 = vadd.f32 %v1295_v57, %v1272_v49 }
 0x127   : > { %v1411_v6 = vmul.f32 %v1296_v40, %v1296_v40 }
 0x12a   : > { %v1273_v51 = vpop.f32.mrf.mxu2 }
 0x12b   : > { %v1274_v1 = vadd.f32 %v1273_v51, %v1250_v45  ;;  %v1297_v2 = vpop.f32.mrf.mxu3  ;;  %v1228_v4 = vpop.f32.mrf.mxu0 }
 0x12c   : > { %v1252_v56 = vpop.f32.mrf.mxu1 }
 0x12d   : > { %v1298_v5 = vadd.f32 %v1297_v2, %v1274_v1  ;;  %v1253_v11 = vadd.f32 %v1252_v56, %v1228_v4 }
 0x12f   : > { %v1415_v7 = vmul.f32 %v1298_v5, %v1298_v5 }
 0x131   : > { %v1431_v9 = vpack.c.bf16 %v1415_v7, %v1411_v6 }
 0x132   : > { %v1276_v10 = vpop.f32.mrf.mxu2 }
 0x133   : > { %v1300_v12 = vpop.f32.mrf.mxu3  ;;  %1754 = vmatmul.bf16.gmra.mxu2 %v1431_v9  ;;  %v1230_v46 = vpop.f32.mrf.mxu0  ;;  %v1277_v61 = vadd.f32 %v1276_v10, %v1253_v11 }
 0x134   : > { %v1254_v54 = vpop.f32.mrf.mxu1 }
 0x135   : > { %v1255_v62 = vadd.f32 %v1254_v54, %v1230_v46  ;;  %v1301_v63 = vadd.f32 %v1300_v12, %v1277_v61 }
 0x137   : > { %v1419_v14 = vmul.f32 %v1301_v63, %v1301_v63 }
 0x13a   : > { %v1278_v58 = vpop.f32.mrf.mxu2 }
 0x13b   : > { %v1279_v44 = vadd.f32 %v1278_v58, %v1255_v62  ;;  %v1302_v0 = vpop.f32.mrf.mxu3  ;;  %v1314_v59 = vpop.f32.mrf.mxu0 }
 0x13c   : > { %v1338_v3 = vpop.f32.mrf.mxu1 }
 0x13d   : > { %v1303_v13 = vadd.f32 %v1302_v0, %v1279_v44  ;;  %v1339_v17 = vadd.f32 %v1338_v3, %v1314_v59 }
 0x13f   : > { %v1423_v15 = vmul.f32 %v1303_v13, %v1303_v13 }
 0x141   : > { %v1435_v50 = vpack.c.bf16 %v1423_v15, %v1419_v14 }
 0x142   : > { %v1362_v16 = vpop.f32.mrf.mxu2 }
 0x143   : > { %v1386_v60 = vpop.f32.mrf.mxu3  ;;  %1759 = vmatmul.bf16.gmra.mxu2 %v1435_v50  ;;  %v1316_v18 = vpop.f32.mrf.mxu0  ;;  %v1363_v20 = vadd.f32 %v1362_v16, %v1339_v17 }
 0x144   : > { %v1340_v19 = vpop.f32.mrf.mxu1 }
 0x145   : > { %v1341_v21 = vadd.f32 %v1340_v19, %v1316_v18  ;;  %v1387_v23 = vadd.f32 %v1386_v60, %v1363_v20 }
 0x147   : > { %v1404_v29 = vmul.f32 %v1387_v23, %v1387_v23 }
 0x14a   : > { %v1364_v22 = vpop.f32.mrf.mxu2 }
 0x14b   : > { %v1365_v24 = vadd.f32 %v1364_v22, %v1341_v21  ;;  %v1388_v25 = vpop.f32.mrf.mxu3  ;;  %v1319_v26 = vpop.f32.mrf.mxu0 }
 0x14c   : > { %v1343_v27 = vpop.f32.mrf.mxu1 }
 0x14d   : > { %v1389_v28 = vadd.f32 %v1388_v25, %v1365_v24  ;;  %v1344_v34 = vadd.f32 %v1343_v27, %v1319_v26 }
 0x14f   : > { %v1408_v30 = vmul.f32 %v1389_v28, %v1389_v28 }
 0x151   : > { %v1428_v31 = vpack.c.bf16 %v1408_v30, %v1404_v29 }
 0x152   : > { %v1367_v32 = vpop.f32.mrf.mxu2 }
 0x153   : > { %v1391_v35 = vpop.f32.mrf.mxu3  ;;  %1773 = vmatmul.bf16.vlgmr.msra.gmra.mxu3 %v1428_v31  ;;  %v1321_v33 = vpop.f32.mrf.mxu0  ;;  %v1368_v37 = vadd.f32 %v1367_v32, %v1344_v34 }
 0x154   : > { %v1345_v36 = vpop.f32.mrf.mxu1 }
 0x155   : > { %v1346_v38 = vadd.f32 %v1345_v36, %v1321_v33  ;;  %v1392_v52 = vadd.f32 %v1391_v35, %v1368_v37 }
 0x157   : > { %v1412_v43 = vmul.f32 %v1392_v52, %v1392_v52 }
 0x15a   : > { %v1369_v47 = vpop.f32.mrf.mxu2 }
 0x15b   : > { %v1370_v39 = vadd.f32 %v1369_v47, %v1346_v38  ;;  %v1393_v53 = vpop.f32.mrf.mxu3  ;;  %v1324_v41 = vpop.f32.mrf.mxu0 }
 0x15c   : > { %v1348_v57 = vpop.f32.mrf.mxu1 }
 0x15d   : > { %v1394_v42 = vadd.f32 %v1393_v53, %v1370_v39  ;;  %v1349_v45 = vadd.f32 %v1348_v57, %v1324_v41 }
 0x15f   : > { %v1416_v48 = vmul.f32 %v1394_v42, %v1394_v42 }
 0x161   : > { %v1432_v49 = vpack.c.bf16 %v1416_v48, %v1412_v43 }
 0x162   : > { %v1372_v55 = vpop.f32.mrf.mxu2 }
 0x163   : > { %v1396_v51 = vpop.f32.mrf.mxu3  ;;  %1778 = vmatmul.bf16.gmra.mxu3 %v1432_v49  ;;  %v1326_v40 = vpop.f32.mrf.mxu0  ;;  %v1373_v2 = vadd.f32 %v1372_v55, %v1349_v45 }
 0x164   : > { %v1350_v1 = vpop.f32.mrf.mxu1 }
 0x165   : > { %v1351_v4 = vadd.f32 %v1350_v1, %v1326_v40  ;;  %v1397_v5 = vadd.f32 %v1396_v51, %v1373_v2 }
 0x167   : > { %v1420_v9 = vmul.f32 %v1397_v5, %v1397_v5 }
 0x16a   : > { %v1374_v56 = vpop.f32.mrf.mxu2 }
 0x16b   : > { %v1375_v6 = vadd.f32 %v1374_v56, %v1351_v4  ;;  %v1398_v7 = vpop.f32.mrf.mxu3  ;;  %v1702_v12 = vpop.f32.mrf.mxu0 }
 0x16c   : > { %v1703_v58 = vadd.f32 1e-06, %v1702_v12 }
 0x16d   : > { %v1399_v8 = vadd.f32 %v1398_v7, %v1375_v6 }
 0x16f   : > { %v1424_v10 = vmul.f32 %v1399_v8, %v1399_v8 }
 0x170   : > { %v1726_v46 = vpop.f32.mrf.mxu1 }
 0x171   : > { %v1436_v11 = vpack.c.bf16 %v1424_v10, %v1420_v9  ;;  %v1727_v44 = vadd.f32 %v1726_v46, %v1703_v58 }
 0x173   : > { %1783 = vmatmul.bf16.gmra.mxu3 %v1436_v11  ;;  %v1704_v61 = vpop.f32.mrf.mxu0 }
 0x174   : > { %v1705_v14 = vadd.f32 1e-06, %v1704_v61 }
 0x178   : > { %v1728_v62 = vpop.f32.mrf.mxu1 }
 0x179   : > { %v1729_v50 = vadd.f32 %v1728_v62, %v1705_v14 }
 0x17b   : > { %v1707_v13 = vpop.f32.mrf.mxu0 }
 0x17c   : > { %v1708_v21 = vadd.f32 1e-06, %v1707_v13 }
 0x180   : > { %v1731_v15 = vpop.f32.mrf.mxu1 }
 0x181   : > { %v1732_v24 = vadd.f32 %v1731_v15, %v1708_v21 }
 0x183   : > { %v1709_v22 = vpop.f32.mrf.mxu0 }
 0x184   : > { %v1710_v32 = vadd.f32 1e-06, %v1709_v22 }
 0x188   : > { %v1733_v25 = vpop.f32.mrf.mxu1 }
 0x189   : > { %v1734_v35 = vadd.f32 %v1733_v25, %v1710_v32 }
 0x18b   : > { %v1712_v33 = vpop.f32.mrf.mxu0 }
 0x18c   : > { %v1713_v41 = vadd.f32 1e-06, %v1712_v33 }
 0x190   : > { %v1736_v37 = vpop.f32.mrf.mxu1 }
 0x191   : > { %v1737_v42 = vadd.f32 %v1736_v37, %v1713_v41 }
 0x193   : > { %v1714_v48 = vpop.f32.mrf.mxu0 }
 0x194   : > { %v1715_v1 = vadd.f32 1e-06, %v1714_v48 }
 0x198   : > { %v1738_v51 = vpop.f32.mrf.mxu1 }
 0x199   : > { %v1739_v56 = vadd.f32 %v1738_v51, %v1715_v1 }
 0x1a6   : > { %v1750_v54 = vpop.f32.mrf.mxu2 }
 0x1a7   : > { %v1751_v0 = vadd.f32 %v1750_v54, %v1727_v44 }
 0x1ae   : > { %v1752_v63 = vpop.f32.mrf.mxu2 }
 0x1af   : > { %v1753_v17 = vadd.f32 %v1752_v63, %v1729_v50 }
 0x1b6   : > { %v1755_v16 = vpop.f32.mrf.mxu2 }
 0x1b7   : > { %v1756_v26 = vadd.f32 %v1755_v16, %v1732_v24 }
 0x1be   : > { %v1757_v27 = vpop.f32.mrf.mxu2 }
 0x1bf   : > { %v1758_v36 = vadd.f32 %v1757_v27, %v1734_v35 }
 0x1c6   : > { %v1760_v39 = vpop.f32.mrf.mxu2 }
 0x1c7   : > { %v1761_v43 = vadd.f32 %v1760_v39, %v1737_v42 }
 0x1ce   : > { %v1762_v2 = vpop.f32.mrf.mxu2 }
 0x1cf   : > { %v1763_v5 = vadd.f32 %v1762_v2, %v1739_v56 }
 0x1d6   : > { %v1774_v59 = vpop.f32.mrf.mxu3 }
 0x1d7   : > { %v1775_v3 = vadd.f32 %v1774_v59, %v1751_v0 }
 0x1d9   : > { %2748 = vlog2.f32 %v1775_v3 }
 0x1de   : > { %v1776_v60 = vpop.f32.mrf.mxu3 }
 0x1df   : > { %v2749_v18 = vpop.eup %2748  ;;  %v1777_v19 = vadd.f32 %v1776_v60, %v1753_v17 }
 0x1e0   : > { %v1790_v20 = vmul.f32 0.6931472, %v2749_v18 }
 0x1e1   : > { %2750 = vlog2.f32 %v1777_v19 }
 0x1e2   : > { %v1801_v23 = vmul.f32 0.4342945, %v1790_v20 }
 0x1e4   : > { %1807 = vst [vmem:[%s3827_s27] sm:$0xff] %v1801_v23 }
 0x1e6   : > { %v1779_v28 = vpop.f32.mrf.mxu3 }
 0x1e7   : > { %v2751_v29 = vpop.eup %2750  ;;  %v1780_v30 = vadd.f32 %v1779_v28, %v1756_v26 }
 0x1e8   : > { %v1792_v31 = vmul.f32 0.6931472, %v2751_v29 }
 0x1e9   : > { %2752 = vlog2.f32 %v1780_v30 }
 0x1ea   : > { %v1802_v34 = vmul.f32 0.4342945, %v1792_v31 }
 0x1ec   : > { %1808 = vst [vmem:[%s3827_s27 + $0x8] sm:$0xff] %v1802_v34 }
 0x1ee   : > { %v1781_v38 = vpop.f32.mrf.mxu3 }
 0x1ef   : > { %v2753_v47 = vpop.eup %2752  ;;  %v1782_v52 = vadd.f32 %v1781_v38, %v1758_v36 }
 0x1f0   : > { %v1794_v53 = vmul.f32 0.6931472, %v2753_v47 }
 0x1f1   : > { %2754 = vlog2.f32 %v1782_v52 }
 0x1f2   : > { %v1803_v57 = vmul.f32 0.4342945, %v1794_v53 }
 0x1f4   : > { %1809 = vst [vmem:[%s3827_s27 + $0x10] sm:$0xff] %v1803_v57 }
 0x1f6   : > { %v1784_v49 = vpop.f32.mrf.mxu3 }
 0x1f7   : > { %v2755_v55 = vpop.eup %2754  ;;  %v1785_v45 = vadd.f32 %v1784_v49, %v1761_v43 }
 0x1f8   : > { %v1796_v40 = vmul.f32 0.6931472, %v2755_v55 }
 0x1f9   : > { %2756 = vlog2.f32 %v1785_v45 }
 0x1fa   : > { %v1804_v4 = vmul.f32 0.4342945, %v1796_v40 }
 0x1fc   : > { %1810 = vst [vmem:[%s3827_s27 + $0x18] sm:$0xff] %v1804_v4 }
 0x1fe   : > { %v1786_v6 = vpop.f32.mrf.mxu3 }
 0x1ff   : > { %v2757_v7 = vpop.eup %2756  ;;  %v1787_v8 = vadd.f32 %v1786_v6, %v1763_v5 }
 0x200   : > { %v1798_v9 = vmul.f32 0.6931472, %v2757_v7 }
 0x201   : > { %2758 = vlog2.f32 %v1787_v8 }
 0x202   : > { %v1805_v10 = vmul.f32 0.4342945, %v1798_v9 }
 0x204   : > { %1811 = vst [vmem:[%s3827_s27 + $0x20] sm:$0xff] %v1805_v10 }
 0x207   : > { %v2759_v11 = vpop.eup %2758 }
 0x208   : > { %v1800_v12 = vmul.f32 0.6931472, %v2759_v11 }
 0x20a   : > { %v1806_v46 = vmul.f32 0.4342945, %v1800_v12 }
 0x20c   : > { %1812 = vst [vmem:[%s3827_s27 + $0x28] sm:$0xff] %v1806_v46 }
 0x20d PF: > { %s13_s12 = sadd.s32 1, %s2766_s12  }
 0x20e   : > { %p10_p4 = scmp.ge.s32.totalorder %s13_s12, 4  }
 0x210   :  { %12 = sbr.rel (!%p10_p4) target bundleno = 1 (0x1), region = 62 }

</bundles_post_ra>
